<compile_context>
chip_gen: v6e
topology: v6e:2x2x1
jax: 0.10.0
libtpu: 0.0.40
codegen_flags: <defaults>
</compile_context>

<pallas_src>
import functools

import jax
import jax.numpy as jnp
import numpy as np
from jax import lax
from jax.experimental import pallas as pl
from jax.experimental.pallas import tpu as pltpu

EPS = 1e-5  # PyTorch nn.LayerNorm default eps


# -------------------- generation-aware sizing --------------------
def _vmem_budget_bytes():
    """Scoped-VMEM budget from physical VMEM: ~96 MiB on v5e/v6e, ~48 MiB on v7x."""
    cap = 64 * 1024 * 1024
    try:
        info = pltpu.get_tpu_info()
        cap = int(getattr(info, "vmem_capacity_bytes", cap) or cap)
    except Exception:
        pass
    return int(min((cap * 3) // 4, 96 * 1024 * 1024))


VMEM_LIMIT = _vmem_budget_bytes()
# Mem-bound row kernels (LN+QKV, final LN) get big row tiles; the MLP kernel keeps a
# smaller row tile so its f32 (rows, k_block) GELU intermediate stays bounded.
ROW_BLOCK_LN = 512 if VMEM_LIMIT >= 64 * 1024 * 1024 else 256
ROW_BLOCK_MLP = 256
MLP_K_BLOCK = 512  # hidden-dim tile (columns of w1 / rows of w2)


def _row_block(n, target):
    """Largest row block <= target that divides n and is a multiple of 8 (or n)."""
    b = min(n, target)
    if b == n:
        return b
    while b >= 8:
        if n % b == 0 and b % 8 == 0:
            return b
        b -= 8
    return n


def _col_block(n, target):
    """Largest column block <= target dividing n and a multiple of 128 (or n)."""
    b = min(n, target)
    if b == n:
        return b
    b = (b // 128) * 128
    while b >= 128:
        if n % b == 0:
            return b
        b -= 128
    return n


def _head_block(num_heads, head_dim, seq):
    """Heads per attention grid step: lane-dense (>=128 output lanes when possible)
    while keeping the f32 score + exp intermediates within ~1/4 of the VMEM budget."""
    valid = [hb for hb in range(1, num_heads + 1)
             if num_heads % hb == 0
             and ((hb * head_dim) % 128 == 0 or hb == num_heads)]
    score_bytes = lambda hb: 2 * hb * seq * seq * 4
    fitting = [hb for hb in valid if score_bytes(hb) <= VMEM_LIMIT // 4]
    return max(fitting) if fitting else min(valid)


# ----------------------------- in-kernel helpers -----------------------------
def _layernorm(x, w, b):
    mu = jnp.mean(x, axis=-1, keepdims=True)
    var = jnp.mean((x - mu) ** 2, axis=-1, keepdims=True)
    return (x - mu) * lax.rsqrt(var + EPS) * w + b


def _gelu_exact(x):
    # nn.GELU() default = exact erf-based GELU
    return 0.5 * x * (1.0 + lax.erf(x * np.float32(1.0 / np.sqrt(2.0))))


# ------------------------------- Pallas kernels -------------------------------
def ln_qkv_kernel(x_ref, nw_ref, nb_ref, wqkv_ref, bqkv_ref, q_ref, k_ref, v_ref):
    """Shared pre-norm + fused QKV projection on a (rows, E) tile.

    One MXU pass with N=3E; the (rows, 3E) intermediate never exists in HBM -- it is
    sliced into the three (rows, E) outputs in VMEM.  The softmax scale is already
    baked into the Q columns of wqkv/bqkv (host-side).
    """
    e = q_ref.shape[1]
    h = _layernorm(x_ref[...], nw_ref[...], nb_ref[...]).astype(jnp.bfloat16)
    y = (jnp.dot(h, wqkv_ref[...], preferred_element_type=jnp.float32)
         + bqkv_ref[...]).astype(jnp.bfloat16)
    q_ref[...] = y[:, :e]
    k_ref[...] = y[:, e:2 * e]
    v_ref[...] = y[:, 2 * e:]


def attention_kernel(num_heads_blk, head_dim, q_ref, k_ref, v_ref, o_ref):
    """One (batch, head-group): blocks are lane-dense (S, Hb*hd) column slices of the
    (B*S, E) Q/K/V buffers; output is written straight back into the same layout
    (no host-side head split/merge transposes).

    The per-head loop is a static unroll -> back-to-back MXU pushes per grid step.
    TODO(synk): flash-style kv-block tiling with online softmax for long S (v7x).
    """
    for h in range(num_heads_blk):
        lo = h * head_dim
        hi = lo + head_dim
        q = q_ref[:, lo:hi]                      # (S, hd) bf16, scale pre-folded
        k = k_ref[:, lo:hi]
        v = v_ref[:, lo:hi]
        s = lax.dot_general(q, k, (((1,), (1,)), ((), ())),
                            preferred_element_type=jnp.float32)      # (S, S) f32
        m = jnp.max(s, axis=-1, keepdims=True)
        e = jnp.exp(s - m)
        p = e * pl.reciprocal(jnp.sum(e, axis=-1, keepdims=True), approx=True)
        o = jnp.dot(p.astype(jnp.bfloat16), v, preferred_element_type=jnp.float32)
        o_ref[:, lo:hi] = o.astype(jnp.bfloat16)


def out_mlp_kernel(x_ref, a_ref, wo_ref, bo_ref, nw_ref, nb_ref,
                   lnw_ref, lnb_ref, b2_ref, w1_ref, b1_ref, w2_ref,
                   o_ref, h_sc, acc_sc):
    """OutProj + residual, shared-LN -> MLP-LN, then the MLP with its hidden dim tiled
    along grid axis 1 ("arbitrary"): per step only one (E, tk) slice of w1 and the
    matching (tk, E) slice of w2 live in VMEM; partial products accumulate into an
    f32 (rows, E) scratch."""
    j = pl.program_id(1)

    @pl.when(j == 0)
    def _init():
        x = x_ref[...]                                               # f32 residual
        x = x + (jnp.dot(a_ref[...], wo_ref[...],
                         preferred_element_type=jnp.float32) + bo_ref[...])
        h = _layernorm(x, nw_ref[...], nb_ref[...])                  # shared pre-norm
        h = _layernorm(h, lnw_ref[...], lnb_ref[...])                # MLP's own LN
        h_sc[...] = h.astype(jnp.bfloat16)
        acc_sc[...] = x + b2_ref[...]                                # residual + b2

    h1 = jnp.dot(h_sc[...], w1_ref[...],
                 preferred_element_type=jnp.float32) + b1_ref[...]
    h1 = _gelu_exact(h1)
    acc_sc[...] += jnp.dot(h1.astype(jnp.bfloat16), w2_ref[...],
                           preferred_element_type=jnp.float32)

    @pl.when(j == pl.num_programs(1) - 1)
    def _finalize():
        o_ref[...] = acc_sc[...]


def final_norm_kernel(x_ref, nw_ref, nb_ref, o_ref):
    o_ref[...] = _layernorm(x_ref[...], nw_ref[...], nb_ref[...])


# ------------------------------- host wrappers -------------------------------
def _compiler_params(semantics):
    return pltpu.CompilerParams(dimension_semantics=semantics,
                                vmem_limit_bytes=VMEM_LIMIT)


def _resident(shape):
    """Constant-index (VMEM-resident) operand: single-buffered (nothing to pipeline)."""
    idx = lambda *_: (0,) * len(shape)
    try:
        return pl.BlockSpec(tuple(shape), idx, pipeline_mode=pl.Buffered(1))
    except TypeError:  # BlockSpec without pipeline_mode support
        return pl.BlockSpec(tuple(shape), idx)


def run_ln_qkv(x2, nw, nb, wqkv, bqkv):
    n, e = x2.shape
    br = _row_block(n, ROW_BLOCK_LN)
    rows = pl.BlockSpec((br, e), lambda i: (i, 0))
    return pl.pallas_call(
        ln_qkv_kernel,
        grid=(n // br,),
        in_specs=[rows, _resident(nw.shape), _resident(nb.shape),
                  _resident(wqkv.shape), _resident(bqkv.shape)],
        out_specs=(rows, rows, rows),
        out_shape=(jax.ShapeDtypeStruct((n, e), jnp.bfloat16),) * 3,
        compiler_params=_compiler_params(("parallel",)),
    )(x2, nw, nb, wqkv, bqkv)


def run_attention(q, k, v, batch, seq, num_heads, head_dim):
    n, e = q.shape                                   # n = B*S, e = H*hd
    hb = _head_block(num_heads, head_dim, seq)
    gw = hb * head_dim                               # lane width per grid step
    blk = pl.BlockSpec((seq, gw), lambda b, g: (b, g))
    return pl.pallas_call(
        functools.partial(attention_kernel, hb, head_dim),
        grid=(batch, num_heads // hb),
        in_specs=[blk, blk, blk],
        out_specs=blk,
        out_shape=jax.ShapeDtypeStruct((n, e), jnp.bfloat16),
        compiler_params=_compiler_params(("parallel", "parallel")),
    )(q, k, v)


def run_out_mlp(x2, attn, wo, bo, nw, nb, lnw, lnb, w1, b1, w2, b2):
    n, e = x2.shape
    mlp_dim = w1.shape[1]
    br = _row_block(n, ROW_BLOCK_MLP)
    tk = _col_block(mlp_dim, MLP_K_BLOCK)
    row_spec = pl.BlockSpec((br, e), lambda i, j: (i, 0))
    return pl.pallas_call(
        out_mlp_kernel,
        grid=(n // br, mlp_dim // tk),               # hidden (reduction) axis last
        in_specs=[row_spec, row_spec,
                  _resident(wo.shape), _resident(bo.shape),
                  _resident(nw.shape), _resident(nb.shape),
                  _resident(lnw.shape), _resident(lnb.shape),
                  _resident(b2.shape),
                  pl.BlockSpec((e, tk), lambda i, j: (0, j)),   # w1 hidden slice
                  pl.BlockSpec((1, tk), lambda i, j: (0, j)),   # b1 hidden slice
                  pl.BlockSpec((tk, e), lambda i, j: (j, 0))],  # w2 hidden slice
        out_specs=pl.BlockSpec((br, e), lambda i, j: (i, 0)),
        out_shape=jax.ShapeDtypeStruct((n, e), jnp.float32),
        scratch_shapes=[pltpu.VMEM((br, e), jnp.bfloat16),      # normalized MLP input
                        pltpu.VMEM((br, e), jnp.float32)],      # residual + accumulator
        input_output_aliases={0: 0},                 # rewrite residual stream in place
        compiler_params=_compiler_params(("parallel", "arbitrary")),
    )(x2, attn, wo, bo, nw, nb, lnw, lnb, b2, w1, b1, w2)


def run_final_norm(x2, nw, nb):
    n, e = x2.shape
    br = _row_block(n, ROW_BLOCK_LN)
    rows = pl.BlockSpec((br, e), lambda i: (i, 0))
    return pl.pallas_call(
        final_norm_kernel,
        grid=(n // br,),
        in_specs=[rows, _resident(nw.shape), _resident(nb.shape)],
        out_specs=rows,
        out_shape=jax.ShapeDtypeStruct((n, e), jnp.float32),
        input_output_aliases={0: 0},
        compiler_params=_compiler_params(("parallel",)),
    )(x2, nw, nb)


@functools.partial(jax.jit, static_argnames=("num_heads",))
def transformer_forward(x, params, *, num_heads):
    b, s, e = x.shape
    hd = e // num_heads
    scale = float(hd) ** -0.5
    nw, nb = params["norm"]
    x2 = x.reshape(b * s, e)                         # flattened row layout
    # TODO(synk): cross-call DMA future (P10) to prefetch layer i+1 weights behind
    #             layer i compute instead of exposing the per-layer weight DMA.
    for layer in params["layers"]:
        (wq, bq, wk, bk, wv, bv, wo, bo, lnw, lnb, w1, b1, w2, b2) = layer
        # Fused QKV weight; softmax scale folded into the Q projection so the
        # attention kernel never scales the (S, S) score tile.
        wqkv = jnp.concatenate([wq * scale, wk, wv], axis=1)
        bqkv = jnp.concatenate([bq * scale, bk, bv], axis=1)
        q, k, v = run_ln_qkv(x2, nw, nb, wqkv, bqkv)
        attn = run_attention(q, k, v, b, s, num_heads, hd)
        x2 = run_out_mlp(x2, attn, wo, bo, nw, nb, lnw, lnb, w1, b1, w2, b2)
    out = run_final_norm(x2, nw, nb)
    return out.reshape(b, s, e)


# ------------------------- parameter init (deterministic) -------------------------
def init_params(key, dim, depth, mlp_dim):
    def lin(k, fan_in, fan_out):
        kw, kb = jax.random.split(k)
        w = (jax.random.normal(kw, (fan_in, fan_out), jnp.float32) * 0.02).astype(jnp.bfloat16)
        b = jax.random.normal(kb, (1, fan_out), jnp.float32) * 0.02
        return w, b

    params = {"norm": (jnp.ones((1, dim), jnp.float32),
                       jnp.zeros((1, dim), jnp.float32)),
              "layers": []}
    for lk in jax.random.split(key, depth):
        kq, kk, kv, ko, k1, k2 = jax.random.split(lk, 6)
        wq, bq = lin(kq, dim, dim)
        wk, bk = lin(kk, dim, dim)
        wv, bv = lin(kv, dim, dim)
        wo, bo = lin(ko, dim, dim)
        lnw = jnp.ones((1, dim), jnp.float32)
        lnb = jnp.zeros((1, dim), jnp.float32)
        w1, b1 = lin(k1, dim, mlp_dim)
        w2, b2 = lin(k2, mlp_dim, dim)
        params["layers"].append((wq, bq, wk, bk, wv, bv, wo, bo,
                                 lnw, lnb, w1, b1, w2, b2))
    return params


# ------------------------------- pure-JAX reference -------------------------------
def _ref_ln(x, w, b):
    mu = x.mean(-1, keepdims=True)
    var = ((x - mu) ** 2).mean(-1, keepdims=True)
    return (x - mu) / jnp.sqrt(var + EPS) * w + b


def reference_forward(x, params, num_heads):
    nw, nb = params["norm"]
    b_, s_, e_ = x.shape
    hd = e_ // num_heads
    f32 = lambda t: t.astype(jnp.float32)
    for (wq, bq, wk, bk, wv, bv, wo, bo, lnw, lnb, w1, b1, w2, b2) in params["layers"]:
        h = _ref_ln(x, nw, nb)
        q = h @ f32(wq) + bq
        k = h @ f32(wk) + bk
        v = h @ f32(wv) + bv
        qh = q.reshape(b_, s_, num_heads, hd).transpose(0, 2, 1, 3)
        kh = k.reshape(b_, s_, num_heads, hd).transpose(0, 2, 1, 3)
        vh = v.reshape(b_, s_, num_heads, hd).transpose(0, 2, 1, 3)
        a = jnp.einsum("bhqd,bhkd->bhqk", qh, kh) * (hd ** -0.5)
        a = jax.nn.softmax(a, axis=-1)
        o = jnp.einsum("bhqk,bhkd->bhqd", a, vh).transpose(0, 2, 1, 3).reshape(b_, s_, e_)
        x = x + (o @ f32(wo) + bo)
        h = _ref_ln(x, nw, nb)
        h = _ref_ln(h, lnw, lnb)
        h = jax.nn.gelu(h @ f32(w1) + b1, approximate=False)
        x = x + (h @ f32(w2) + b2)
    return _ref_ln(x, nw, nb)


# --------------------------------------- main ---------------------------------------
if __name__ == "__main__":
    B, S = 2, 8
    dim, depth, num_heads, dim_head, mlp_dim = 32, 2, 4, 8, 64  # dim_head unused (as in PyTorch)
    assert dim % num_heads == 0

    key = jax.random.PRNGKey(0)
    kx, kp = jax.random.split(key)
    x = jax.random.normal(kx, (B, S, dim), jnp.float32)
    params = init_params(kp, dim, depth, mlp_dim)

    ref = reference_forward(x, params, num_heads)

    out = transformer_forward(x, params, num_heads=num_heads)
    out = jax.block_until_ready(out)

    # bf16 MXU inputs + approx-reciprocal softmax => slightly looser tolerance than f32.
    np.testing.assert_allclose(np.asarray(out), np.asarray(ref), atol=2e-2, rtol=2e-2)

    print("KERNEL_OK")
</pallas_src>

<mosaic_0001>
module attributes {stable_mosaic.version = 11 : i64} {
  func.func @ln_qkv_kernel(%arg0: i32, %arg1: memref<16x32xf32, #tpu.memory_space<vmem>>, %arg2: memref<1x32xf32, #tpu.memory_space<vmem>>, %arg3: memref<1x32xf32, #tpu.memory_space<vmem>>, %arg4: memref<32x96xbf16, #tpu.memory_space<vmem>>, %arg5: memref<1x96xf32, #tpu.memory_space<vmem>>, %arg6: memref<16x32xbf16, #tpu.memory_space<vmem>>, %arg7: memref<16x32xbf16, #tpu.memory_space<vmem>>, %arg8: memref<16x32xbf16, #tpu.memory_space<vmem>>) attributes {dimension_semantics = [#tpu.dimension_semantics<parallel>], iteration_bounds = array<i64: 1>, scalar_prefetch = 0 : i64, scratch_operands = 0 : i64, tpu.core_type = #tpu.core_type<tc>, window_params = [{transform_indices = @transform_0, window_bounds = array<i64: 16, 32>}, {pipeline_mode = #tpu.pipeline_mode<synchronous>, transform_indices = @transform_1, window_bounds = array<i64: 1, 32>}, {pipeline_mode = #tpu.pipeline_mode<synchronous>, transform_indices = @transform_2, window_bounds = array<i64: 1, 32>}, {pipeline_mode = #tpu.pipeline_mode<synchronous>, transform_indices = @transform_3, window_bounds = array<i64: 32, 96>}, {pipeline_mode = #tpu.pipeline_mode<synchronous>, transform_indices = @transform_4, window_bounds = array<i64: 1, 96>}, {transform_indices = @transform_5, window_bounds = array<i64: 16, 32>}, {transform_indices = @transform_6, window_bounds = array<i64: 16, 32>}, {transform_indices = @transform_7, window_bounds = array<i64: 16, 32>}]} {
    %c0 = arith.constant 0 : index
    %c0_0 = arith.constant 0 : index
    %0 = vector.load %arg1[%c0, %c0_0] : memref<16x32xf32, #tpu.memory_space<vmem>>, vector<16x32xf32>
    %c0_1 = arith.constant 0 : index
    %c0_2 = arith.constant 0 : index
    %1 = vector.load %arg2[%c0_1, %c0_2] : memref<1x32xf32, #tpu.memory_space<vmem>>, vector<1x32xf32>
    %c0_3 = arith.constant 0 : index
    %c0_4 = arith.constant 0 : index
    %2 = vector.load %arg3[%c0_3, %c0_4] : memref<1x32xf32, #tpu.memory_space<vmem>>, vector<1x32xf32>
    %cst = arith.constant dense<0.000000e+00> : vector<16xf32>
    %3 = vector.multi_reduction <add>, %0, %cst [1] : vector<16x32xf32> to vector<16xf32>
    %4 = vector.shape_cast %3 : vector<16xf32> to vector<16x1xf32>
    %cst_5 = arith.constant 3.200000e+01 : f32
    %5 = vector.broadcast %cst_5 : f32 to vector<16x1xf32>
    %6 = arith.divf %4, %5 : vector<16x1xf32>
    %7 = vector.broadcast %6 : vector<16x1xf32> to vector<16x32xf32>
    %8 = arith.subf %0, %7 : vector<16x32xf32>
    %9 = arith.mulf %8, %8 : vector<16x32xf32>
    %cst_6 = arith.constant dense<0.000000e+00> : vector<16xf32>
    %10 = vector.multi_reduction <add>, %9, %cst_6 [1] : vector<16x32xf32> to vector<16xf32>
    %11 = vector.shape_cast %10 : vector<16xf32> to vector<16x1xf32>
    %cst_7 = arith.constant 3.200000e+01 : f32
    %12 = vector.broadcast %cst_7 : f32 to vector<16x1xf32>
    %13 = arith.divf %11, %12 : vector<16x1xf32>
    %14 = vector.broadcast %6 : vector<16x1xf32> to vector<16x32xf32>
    %15 = arith.subf %0, %14 : vector<16x32xf32>
    %cst_8 = arith.constant 9.99999974E-6 : f32
    %16 = vector.broadcast %cst_8 : f32 to vector<16x1xf32>
    %17 = arith.addf %13, %16 : vector<16x1xf32>
    %18 = math.rsqrt %17 : vector<16x1xf32>
    %19 = vector.broadcast %18 : vector<16x1xf32> to vector<16x32xf32>
    %20 = arith.mulf %15, %19 : vector<16x32xf32>
    %21 = vector.broadcast %1 : vector<1x32xf32> to vector<16x32xf32>
    %22 = arith.mulf %20, %21 : vector<16x32xf32>
    %23 = vector.broadcast %2 : vector<1x32xf32> to vector<16x32xf32>
    %24 = arith.addf %22, %23 : vector<16x32xf32>
    %25 = arith.truncf %24 : vector<16x32xf32> to vector<16x32xbf16>
    %c0_9 = arith.constant 0 : index
    %c0_10 = arith.constant 0 : index
    %26 = vector.load %arg4[%c0_9, %c0_10] : memref<32x96xbf16, #tpu.memory_space<vmem>>, vector<32x96xbf16>
    %cst_11 = arith.constant dense<0.000000e+00> : vector<16x96xf32>
    %27 = tpu.matmul %25, %26, %cst_11 {dimension_numbers = #tpu.dot_dimension_numbers<[1], [0], [0], [1], [0, 0, 1, 1], [], []>} : vector<16x32xbf16>, vector<32x96xbf16>, vector<16x96xf32> -> vector<16x96xf32>
    %c0_12 = arith.constant 0 : index
    %c0_13 = arith.constant 0 : index
    %28 = vector.load %arg5[%c0_12, %c0_13] : memref<1x96xf32, #tpu.memory_space<vmem>>, vector<1x96xf32>
    %29 = vector.broadcast %28 : vector<1x96xf32> to vector<16x96xf32>
    %30 = arith.addf %27, %29 : vector<16x96xf32>
    %31 = arith.truncf %30 : vector<16x96xf32> to vector<16x96xbf16>
    %32 = vector.extract_strided_slice %31 {offsets = [0, 0], sizes = [16, 32], strides = [1, 1]} : vector<16x96xbf16> to vector<16x32xbf16>
    %c0_14 = arith.constant 0 : index
    %c0_15 = arith.constant 0 : index
    %33 = vector.load %arg6[%c0_14, %c0_15] : memref<16x32xbf16, #tpu.memory_space<vmem>>, vector<16x32xbf16>
    tpu.vector_store %arg6[%c0_14, %c0_15], %32 {strides = array<i32>} : memref<16x32xbf16, #tpu.memory_space<vmem>>, vector<16x32xbf16>,
    %34 = vector.extract_strided_slice %31 {offsets = [0, 32], sizes = [16, 32], strides = [1, 1]} : vector<16x96xbf16> to vector<16x32xbf16>
    %c0_16 = arith.constant 0 : index
    %c0_17 = arith.constant 0 : index
    %35 = vector.load %arg7[%c0_16, %c0_17] : memref<16x32xbf16, #tpu.memory_space<vmem>>, vector<16x32xbf16>
    tpu.vector_store %arg7[%c0_16, %c0_17], %34 {strides = array<i32>} : memref<16x32xbf16, #tpu.memory_space<vmem>>, vector<16x32xbf16>,
    %36 = vector.extract_strided_slice %31 {offsets = [0, 64], sizes = [16, 32], strides = [1, 1]} : vector<16x96xbf16> to vector<16x32xbf16>
    %c0_18 = arith.constant 0 : index
    %c0_19 = arith.constant 0 : index
    %37 = vector.load %arg8[%c0_18, %c0_19] : memref<16x32xbf16, #tpu.memory_space<vmem>>, vector<16x32xbf16>
    tpu.vector_store %arg8[%c0_18, %c0_19], %36 {strides = array<i32>} : memref<16x32xbf16, #tpu.memory_space<vmem>>, vector<16x32xbf16>,
    return
  }
  func.func @transform_0(%arg0: i32) -> (i32, i32) {
    %c0_i32 = arith.constant 0 : i32
    %c0_i32_0 = arith.constant 0 : i32
    return %arg0, %c0_i32 : i32, i32
  }
  func.func @transform_1(%arg0: i32) -> (i32, i32) {
    %c0_i32 = arith.constant 0 : i32
    %c0_i32_0 = arith.constant 0 : i32
    %c0_i32_1 = arith.constant 0 : i32
    return %c0_i32, %c0_i32_0 : i32, i32
  }
  func.func @transform_2(%arg0: i32) -> (i32, i32) {
    %c0_i32 = arith.constant 0 : i32
    %c0_i32_0 = arith.constant 0 : i32
    %c0_i32_1 = arith.constant 0 : i32
    return %c0_i32, %c0_i32_0 : i32, i32
  }
  func.func @transform_3(%arg0: i32) -> (i32, i32) {
    %c0_i32 = arith.constant 0 : i32
    %c0_i32_0 = arith.constant 0 : i32
    %c0_i32_1 = arith.constant 0 : i32
    return %c0_i32, %c0_i32_0 : i32, i32
  }
  func.func @transform_4(%arg0: i32) -> (i32, i32) {
    %c0_i32 = arith.constant 0 : i32
    %c0_i32_0 = arith.constant 0 : i32
    %c0_i32_1 = arith.constant 0 : i32
    return %c0_i32, %c0_i32_0 : i32, i32
  }
  func.func @transform_5(%arg0: i32) -> (i32, i32) {
    %c0_i32 = arith.constant 0 : i32
    %c0_i32_0 = arith.constant 0 : i32
    return %arg0, %c0_i32 : i32, i32
  }
  func.func @transform_6(%arg0: i32) -> (i32, i32) {
    %c0_i32 = arith.constant 0 : i32
    %c0_i32_0 = arith.constant 0 : i32
    return %arg0, %c0_i32 : i32, i32
  }
  func.func @transform_7(%arg0: i32) -> (i32, i32) {
    %c0_i32 = arith.constant 0 : i32
    %c0_i32_0 = arith.constant 0 : i32
    return %arg0, %c0_i32 : i32, i32
  }
}

module attributes {stable_mosaic.version = 11 : i64} {
  func.func @attention_kernel(%arg0: i32, %arg1: i32, %arg2: memref<8x32xbf16, #tpu.memory_space<vmem>>, %arg3: memref<8x32xbf16, #tpu.memory_space<vmem>>, %arg4: memref<8x32xbf16, #tpu.memory_space<vmem>>, %arg5: memref<8x32xbf16, #tpu.memory_space<vmem>>) attributes {dimension_semantics = [#tpu.dimension_semantics<parallel>, #tpu.dimension_semantics<parallel>], iteration_bounds = array<i64: 2, 1>, scalar_prefetch = 0 : i64, scratch_operands = 0 : i64, tpu.core_type = #tpu.core_type<tc>, window_params = [{transform_indices = @transform_0, window_bounds = array<i64: 8, 32>}, {transform_indices = @transform_1, window_bounds = array<i64: 8, 32>}, {transform_indices = @transform_2, window_bounds = array<i64: 8, 32>}, {transform_indices = @transform_3, window_bounds = array<i64: 8, 32>}]} {
    %c0 = arith.constant 0 : index
    %c0_0 = arith.constant 0 : index
    %0 = vector.load %arg2[%c0, %c0_0] : memref<8x32xbf16, #tpu.memory_space<vmem>>, vector<8x8xbf16>
    %c0_1 = arith.constant 0 : index
    %c0_2 = arith.constant 0 : index
    %1 = vector.load %arg3[%c0_1, %c0_2] : memref<8x32xbf16, #tpu.memory_space<vmem>>, vector<8x8xbf16>
    %c0_3 = arith.constant 0 : index
    %c0_4 = arith.constant 0 : index
    %2 = vector.load %arg4[%c0_3, %c0_4] : memref<8x32xbf16, #tpu.memory_space<vmem>>, vector<8x8xbf16>
    %cst = arith.constant dense<0.000000e+00> : vector<8x8xf32>
    %3 = tpu.matmul %0, %1, %cst {dimension_numbers = #tpu.dot_dimension_numbers<[1], [1], [0], [0], [0, 0, 1, 0], [], []>} : vector<8x8xbf16>, vector<8x8xbf16>, vector<8x8xf32> -> vector<8x8xf32>
    %cst_5 = arith.constant dense<0xFF800000> : vector<8xf32>
    %4 = vector.multi_reduction <maximumf>, %3, %cst_5 [1] : vector<8x8xf32> to vector<8xf32>
    %5 = vector.shape_cast %4 : vector<8xf32> to vector<8x1xf32>
    %6 = vector.broadcast %5 : vector<8x1xf32> to vector<8x8xf32>
    %7 = arith.subf %3, %6 : vector<8x8xf32>
    %8 = math.exp %7 : vector<8x8xf32>
    %cst_6 = arith.constant dense<0.000000e+00> : vector<8xf32>
    %9 = vector.multi_reduction <add>, %8, %cst_6 [1] : vector<8x8xf32> to vector<8xf32>
    %10 = vector.shape_cast %9 : vector<8xf32> to vector<8x1xf32>
    %11 = tpu.reciprocal %10 {approx = true} : vector<8x1xf32> -> vector<8x1xf32>
    %12 = vector.broadcast %11 : vector<8x1xf32> to vector<8x8xf32>
    %13 = arith.mulf %8, %12 : vector<8x8xf32>
    %14 = arith.truncf %13 : vector<8x8xf32> to vector<8x8xbf16>
    %cst_7 = arith.constant dense<0.000000e+00> : vector<8x8xf32>
    %15 = tpu.matmul %14, %2, %cst_7 {dimension_numbers = #tpu.dot_dimension_numbers<[1], [0], [0], [1], [0, 0, 1, 1], [], []>} : vector<8x8xbf16>, vector<8x8xbf16>, vector<8x8xf32> -> vector<8x8xf32>
    %16 = arith.truncf %15 : vector<8x8xf32> to vector<8x8xbf16>
    %c0_8 = arith.constant 0 : index
    %c0_9 = arith.constant 0 : index
    %17 = vector.load %arg5[%c0_8, %c0_9] : memref<8x32xbf16, #tpu.memory_space<vmem>>, vector<8x8xbf16>
    tpu.vector_store %arg5[%c0_8, %c0_9], %16 {strides = array<i32>} : memref<8x32xbf16, #tpu.memory_space<vmem>>, vector<8x8xbf16>,
    %c0_10 = arith.constant 0 : index
    %c8 = arith.constant 8 : index
    %18 = vector.load %arg2[%c0_10, %c8] : memref<8x32xbf16, #tpu.memory_space<vmem>>, vector<8x8xbf16>
    %c0_11 = arith.constant 0 : index
    %c8_12 = arith.constant 8 : index
    %19 = vector.load %arg3[%c0_11, %c8_12] : memref<8x32xbf16, #tpu.memory_space<vmem>>, vector<8x8xbf16>
    %c0_13 = arith.constant 0 : index
    %c8_14 = arith.constant 8 : index
    %20 = vector.load %arg4[%c0_13, %c8_14] : memref<8x32xbf16, #tpu.memory_space<vmem>>, vector<8x8xbf16>
    %cst_15 = arith.constant dense<0.000000e+00> : vector<8x8xf32>
    %21 = tpu.matmul %18, %19, %cst_15 {dimension_numbers = #tpu.dot_dimension_numbers<[1], [1], [0], [0], [0, 0, 1, 0], [], []>} : vector<8x8xbf16>, vector<8x8xbf16>, vector<8x8xf32> -> vector<8x8xf32>
    %cst_16 = arith.constant dense<0xFF800000> : vector<8xf32>
    %22 = vector.multi_reduction <maximumf>, %21, %cst_16 [1] : vector<8x8xf32> to vector<8xf32>
    %23 = vector.shape_cast %22 : vector<8xf32> to vector<8x1xf32>
    %24 = vector.broadcast %23 : vector<8x1xf32> to vector<8x8xf32>
    %25 = arith.subf %21, %24 : vector<8x8xf32>
    %26 = math.exp %25 : vector<8x8xf32>
    %cst_17 = arith.constant dense<0.000000e+00> : vector<8xf32>
    %27 = vector.multi_reduction <add>, %26, %cst_17 [1] : vector<8x8xf32> to vector<8xf32>
    %28 = vector.shape_cast %27 : vector<8xf32> to vector<8x1xf32>
    %29 = tpu.reciprocal %28 {approx = true} : vector<8x1xf32> -> vector<8x1xf32>
    %30 = vector.broadcast %29 : vector<8x1xf32> to vector<8x8xf32>
    %31 = arith.mulf %26, %30 : vector<8x8xf32>
    %32 = arith.truncf %31 : vector<8x8xf32> to vector<8x8xbf16>
    %cst_18 = arith.constant dense<0.000000e+00> : vector<8x8xf32>
    %33 = tpu.matmul %32, %20, %cst_18 {dimension_numbers = #tpu.dot_dimension_numbers<[1], [0], [0], [1], [0, 0, 1, 1], [], []>} : vector<8x8xbf16>, vector<8x8xbf16>, vector<8x8xf32> -> vector<8x8xf32>
    %34 = arith.truncf %33 : vector<8x8xf32> to vector<8x8xbf16>
    %c0_19 = arith.constant 0 : index
    %c8_20 = arith.constant 8 : index
    %35 = vector.load %arg5[%c0_19, %c8_20] : memref<8x32xbf16, #tpu.memory_space<vmem>>, vector<8x8xbf16>
    tpu.vector_store %arg5[%c0_19, %c8_20], %34 {strides = array<i32>} : memref<8x32xbf16, #tpu.memory_space<vmem>>, vector<8x8xbf16>,
    %c0_21 = arith.constant 0 : index
    %c16 = arith.constant 16 : index
    %36 = vector.load %arg2[%c0_21, %c16] : memref<8x32xbf16, #tpu.memory_space<vmem>>, vector<8x8xbf16>
    %c0_22 = arith.constant 0 : index
    %c16_23 = arith.constant 16 : index
    %37 = vector.load %arg3[%c0_22, %c16_23] : memref<8x32xbf16, #tpu.memory_space<vmem>>, vector<8x8xbf16>
    %c0_24 = arith.constant 0 : index
    %c16_25 = arith.constant 16 : index
    %38 = vector.load %arg4[%c0_24, %c16_25] : memref<8x32xbf16, #tpu.memory_space<vmem>>, vector<8x8xbf16>
    %cst_26 = arith.constant dense<0.000000e+00> : vector<8x8xf32>
    %39 = tpu.matmul %36, %37, %cst_26 {dimension_numbers = #tpu.dot_dimension_numbers<[1], [1], [0], [0], [0, 0, 1, 0], [], []>} : vector<8x8xbf16>, vector<8x8xbf16>, vector<8x8xf32> -> vector<8x8xf32>
    %cst_27 = arith.constant dense<0xFF800000> : vector<8xf32>
    %40 = vector.multi_reduction <maximumf>, %39, %cst_27 [1] : vector<8x8xf32> to vector<8xf32>
    %41 = vector.shape_cast %40 : vector<8xf32> to vector<8x1xf32>
    %42 = vector.broadcast %41 : vector<8x1xf32> to vector<8x8xf32>
    %43 = arith.subf %39, %42 : vector<8x8xf32>
    %44 = math.exp %43 : vector<8x8xf32>
    %cst_28 = arith.constant dense<0.000000e+00> : vector<8xf32>
    %45 = vector.multi_reduction <add>, %44, %cst_28 [1] : vector<8x8xf32> to vector<8xf32>
    %46 = vector.shape_cast %45 : vector<8xf32> to vector<8x1xf32>
    %47 = tpu.reciprocal %46 {approx = true} : vector<8x1xf32> -> vector<8x1xf32>
    %48 = vector.broadcast %47 : vector<8x1xf32> to vector<8x8xf32>
    %49 = arith.mulf %44, %48 : vector<8x8xf32>
    %50 = arith.truncf %49 : vector<8x8xf32> to vector<8x8xbf16>
    %cst_29 = arith.constant dense<0.000000e+00> : vector<8x8xf32>
    %51 = tpu.matmul %50, %38, %cst_29 {dimension_numbers = #tpu.dot_dimension_numbers<[1], [0], [0], [1], [0, 0, 1, 1], [], []>} : vector<8x8xbf16>, vector<8x8xbf16>, vector<8x8xf32> -> vector<8x8xf32>
    %52 = arith.truncf %51 : vector<8x8xf32> to vector<8x8xbf16>
    %c0_30 = arith.constant 0 : index
    %c16_31 = arith.constant 16 : index
    %53 = vector.load %arg5[%c0_30, %c16_31] : memref<8x32xbf16, #tpu.memory_space<vmem>>, vector<8x8xbf16>
    tpu.vector_store %arg5[%c0_30, %c16_31], %52 {strides = array<i32>} : memref<8x32xbf16, #tpu.memory_space<vmem>>, vector<8x8xbf16>,
    %c0_32 = arith.constant 0 : index
    %c24 = arith.constant 24 : index
    %54 = vector.load %arg2[%c0_32, %c24] : memref<8x32xbf16, #tpu.memory_space<vmem>>, vector<8x8xbf16>
    %c0_33 = arith.constant 0 : index
    %c24_34 = arith.constant 24 : index
    %55 = vector.load %arg3[%c0_33, %c24_34] : memref<8x32xbf16, #tpu.memory_space<vmem>>, vector<8x8xbf16>
    %c0_35 = arith.constant 0 : index
    %c24_36 = arith.constant 24 : index
    %56 = vector.load %arg4[%c0_35, %c24_36] : memref<8x32xbf16, #tpu.memory_space<vmem>>, vector<8x8xbf16>
    %cst_37 = arith.constant dense<0.000000e+00> : vector<8x8xf32>
    %57 = tpu.matmul %54, %55, %cst_37 {dimension_numbers = #tpu.dot_dimension_numbers<[1], [1], [0], [0], [0, 0, 1, 0], [], []>} : vector<8x8xbf16>, vector<8x8xbf16>, vector<8x8xf32> -> vector<8x8xf32>
    %cst_38 = arith.constant dense<0xFF800000> : vector<8xf32>
    %58 = vector.multi_reduction <maximumf>, %57, %cst_38 [1] : vector<8x8xf32> to vector<8xf32>
    %59 = vector.shape_cast %58 : vector<8xf32> to vector<8x1xf32>
    %60 = vector.broadcast %59 : vector<8x1xf32> to vector<8x8xf32>
    %61 = arith.subf %57, %60 : vector<8x8xf32>
    %62 = math.exp %61 : vector<8x8xf32>
    %cst_39 = arith.constant dense<0.000000e+00> : vector<8xf32>
    %63 = vector.multi_reduction <add>, %62, %cst_39 [1] : vector<8x8xf32> to vector<8xf32>
    %64 = vector.shape_cast %63 : vector<8xf32> to vector<8x1xf32>
    %65 = tpu.reciprocal %64 {approx = true} : vector<8x1xf32> -> vector<8x1xf32>
    %66 = vector.broadcast %65 : vector<8x1xf32> to vector<8x8xf32>
    %67 = arith.mulf %62, %66 : vector<8x8xf32>
    %68 = arith.truncf %67 : vector<8x8xf32> to vector<8x8xbf16>
    %cst_40 = arith.constant dense<0.000000e+00> : vector<8x8xf32>
    %69 = tpu.matmul %68, %56, %cst_40 {dimension_numbers = #tpu.dot_dimension_numbers<[1], [0], [0], [1], [0, 0, 1, 1], [], []>} : vector<8x8xbf16>, vector<8x8xbf16>, vector<8x8xf32> -> vector<8x8xf32>
    %70 = arith.truncf %69 : vector<8x8xf32> to vector<8x8xbf16>
    %c0_41 = arith.constant 0 : index
    %c24_42 = arith.constant 24 : index
    %71 = vector.load %arg5[%c0_41, %c24_42] : memref<8x32xbf16, #tpu.memory_space<vmem>>, vector<8x8xbf16>
    tpu.vector_store %arg5[%c0_41, %c24_42], %70 {strides = array<i32>} : memref<8x32xbf16, #tpu.memory_space<vmem>>, vector<8x8xbf16>,
    return
  }
  func.func @transform_0(%arg0: i32, %arg1: i32) -> (i32, i32) {
    %c0_i32 = arith.constant 0 : i32
    return %arg0, %arg1 : i32, i32
  }
  func.func @transform_1(%arg0: i32, %arg1: i32) -> (i32, i32) {
    %c0_i32 = arith.constant 0 : i32
    return %arg0, %arg1 : i32, i32
  }
  func.func @transform_2(%arg0: i32, %arg1: i32) -> (i32, i32) {
    %c0_i32 = arith.constant 0 : i32
    return %arg0, %arg1 : i32, i32
  }
  func.func @transform_3(%arg0: i32, %arg1: i32) -> (i32, i32) {
    %c0_i32 = arith.constant 0 : i32
    return %arg0, %arg1 : i32, i32
  }
}

module attributes {stable_mosaic.version = 11 : i64} {
  func.func @out_mlp_kernel(%arg0: i32, %arg1: i32, %arg2: memref<16x32xf32, #tpu.memory_space<vmem>>, %arg3: memref<16x32xbf16, #tpu.memory_space<vmem>>, %arg4: memref<32x32xbf16, #tpu.memory_space<vmem>>, %arg5: memref<1x32xf32, #tpu.memory_space<vmem>>, %arg6: memref<1x32xf32, #tpu.memory_space<vmem>>, %arg7: memref<1x32xf32, #tpu.memory_space<vmem>>, %arg8: memref<1x32xf32, #tpu.memory_space<vmem>>, %arg9: memref<1x32xf32, #tpu.memory_space<vmem>>, %arg10: memref<1x32xf32, #tpu.memory_space<vmem>>, %arg11: memref<32x64xbf16, #tpu.memory_space<vmem>>, %arg12: memref<1x64xf32, #tpu.memory_space<vmem>>, %arg13: memref<64x32xbf16, #tpu.memory_space<vmem>>, %arg14: memref<16x32xf32, #tpu.memory_space<vmem>>, %arg15: memref<16x32xbf16, #tpu.memory_space<vmem>>, %arg16: memref<16x32xf32, #tpu.memory_space<vmem>>) attributes {dimension_semantics = [#tpu.dimension_semantics<parallel>, #tpu.dimension_semantics<arbitrary>], iteration_bounds = array<i64: 1, 1>, scalar_prefetch = 0 : i64, scratch_operands = 2 : i64, tpu.core_type = #tpu.core_type<tc>, window_params = [{transform_indices = @transform_0, window_bounds = array<i64: 16, 32>}, {transform_indices = @transform_1, window_bounds = array<i64: 16, 32>}, {pipeline_mode = #tpu.pipeline_mode<synchronous>, transform_indices = @transform_2, window_bounds = array<i64: 32, 32>}, {pipeline_mode = #tpu.pipeline_mode<synchronous>, transform_indices = @transform_3, window_bounds = array<i64: 1, 32>}, {pipeline_mode = #tpu.pipeline_mode<synchronous>, transform_indices = @transform_4, window_bounds = array<i64: 1, 32>}, {pipeline_mode = #tpu.pipeline_mode<synchronous>, transform_indices = @transform_5, window_bounds = array<i64: 1, 32>}, {pipeline_mode = #tpu.pipeline_mode<synchronous>, transform_indices = @transform_6, window_bounds = array<i64: 1, 32>}, {pipeline_mode = #tpu.pipeline_mode<synchronous>, transform_indices = @transform_7, window_bounds = array<i64: 1, 32>}, {pipeline_mode = #tpu.pipeline_mode<synchronous>, transform_indices = @transform_8, window_bounds = array<i64: 1, 32>}, {transform_indices = @transform_9, window_bounds = array<i64: 32, 64>}, {transform_indices = @transform_10, window_bounds = array<i64: 1, 64>}, {transform_indices = @transform_11, window_bounds = array<i64: 64, 32>}, {transform_indices = @transform_12, window_bounds = array<i64: 16, 32>}]} {
    %c0_i32 = arith.constant 0 : i32
    %0 = arith.cmpi eq, %arg1, %c0_i32 : i32
    %1 = arith.extui %0 : i1 to i32
    %c0_i32_0 = arith.constant 0 : i32
    %2 = arith.cmpi ne, %1, %c0_i32_0 : i32
    scf.if %2 {
      %c0_18 = arith.constant 0 : index
      %c0_19 = arith.constant 0 : index
      %26 = vector.load %arg2[%c0_18, %c0_19] : memref<16x32xf32, #tpu.memory_space<vmem>>, vector<16x32xf32>
      %c0_20 = arith.constant 0 : index
      %c0_21 = arith.constant 0 : index
      %27 = vector.load %arg3[%c0_20, %c0_21] : memref<16x32xbf16, #tpu.memory_space<vmem>>, vector<16x32xbf16>
      %c0_22 = arith.constant 0 : index
      %c0_23 = arith.constant 0 : index
      %28 = vector.load %arg4[%c0_22, %c0_23] : memref<32x32xbf16, #tpu.memory_space<vmem>>, vector<32x32xbf16>
      %cst_24 = arith.constant dense<0.000000e+00> : vector<16x32xf32>
      %29 = tpu.matmul %27, %28, %cst_24 {dimension_numbers = #tpu.dot_dimension_numbers<[1], [0], [0], [1], [0, 0, 1, 1], [], []>} : vector<16x32xbf16>, vector<32x32xbf16>, vector<16x32xf32> -> vector<16x32xf32>
      %c0_25 = arith.constant 0 : index
      %c0_26 = arith.constant 0 : index
      %30 = vector.load %arg5[%c0_25, %c0_26] : memref<1x32xf32, #tpu.memory_space<vmem>>, vector<1x32xf32>
      %31 = vector.broadcast %30 : vector<1x32xf32> to vector<16x32xf32>
      %32 = arith.addf %29, %31 : vector<16x32xf32>
      %33 = arith.addf %26, %32 : vector<16x32xf32>
      %c0_27 = arith.constant 0 : index
      %c0_28 = arith.constant 0 : index
      %34 = vector.load %arg6[%c0_27, %c0_28] : memref<1x32xf32, #tpu.memory_space<vmem>>, vector<1x32xf32>
      %c0_29 = arith.constant 0 : index
      %c0_30 = arith.constant 0 : index
      %35 = vector.load %arg7[%c0_29, %c0_30] : memref<1x32xf32, #tpu.memory_space<vmem>>, vector<1x32xf32>
      %cst_31 = arith.constant dense<0.000000e+00> : vector<16xf32>
      %36 = vector.multi_reduction <add>, %33, %cst_31 [1] : vector<16x32xf32> to vector<16xf32>
      %37 = vector.shape_cast %36 : vector<16xf32> to vector<16x1xf32>
      %cst_32 = arith.constant 3.200000e+01 : f32
      %38 = vector.broadcast %cst_32 : f32 to vector<16x1xf32>
      %39 = arith.divf %37, %38 : vector<16x1xf32>
      %40 = vector.broadcast %39 : vector<16x1xf32> to vector<16x32xf32>
      %41 = arith.subf %33, %40 : vector<16x32xf32>
      %42 = arith.mulf %41, %41 : vector<16x32xf32>
      %cst_33 = arith.constant dense<0.000000e+00> : vector<16xf32>
      %43 = vector.multi_reduction <add>, %42, %cst_33 [1] : vector<16x32xf32> to vector<16xf32>
      %44 = vector.shape_cast %43 : vector<16xf32> to vector<16x1xf32>
      %cst_34 = arith.constant 3.200000e+01 : f32
      %45 = vector.broadcast %cst_34 : f32 to vector<16x1xf32>
      %46 = arith.divf %44, %45 : vector<16x1xf32>
      %47 = vector.broadcast %39 : vector<16x1xf32> to vector<16x32xf32>
      %48 = arith.subf %33, %47 : vector<16x32xf32>
      %cst_35 = arith.constant 9.99999974E-6 : f32
      %49 = vector.broadcast %cst_35 : f32 to vector<16x1xf32>
      %50 = arith.addf %46, %49 : vector<16x1xf32>
      %51 = math.rsqrt %50 : vector<16x1xf32>
      %52 = vector.broadcast %51 : vector<16x1xf32> to vector<16x32xf32>
      %53 = arith.mulf %48, %52 : vector<16x32xf32>
      %54 = vector.broadcast %34 : vector<1x32xf32> to vector<16x32xf32>
      %55 = arith.mulf %53, %54 : vector<16x32xf32>
      %56 = vector.broadcast %35 : vector<1x32xf32> to vector<16x32xf32>
      %57 = arith.addf %55, %56 : vector<16x32xf32>
      %c0_36 = arith.constant 0 : index
      %c0_37 = arith.constant 0 : index
      %58 = vector.load %arg8[%c0_36, %c0_37] : memref<1x32xf32, #tpu.memory_space<vmem>>, vector<1x32xf32>
      %c0_38 = arith.constant 0 : index
      %c0_39 = arith.constant 0 : index
      %59 = vector.load %arg9[%c0_38, %c0_39] : memref<1x32xf32, #tpu.memory_space<vmem>>, vector<1x32xf32>
      %cst_40 = arith.constant dense<0.000000e+00> : vector<16xf32>
      %60 = vector.multi_reduction <add>, %57, %cst_40 [1] : vector<16x32xf32> to vector<16xf32>
      %61 = vector.shape_cast %60 : vector<16xf32> to vector<16x1xf32>
      %cst_41 = arith.constant 3.200000e+01 : f32
      %62 = vector.broadcast %cst_41 : f32 to vector<16x1xf32>
      %63 = arith.divf %61, %62 : vector<16x1xf32>
      %64 = vector.broadcast %63 : vector<16x1xf32> to vector<16x32xf32>
      %65 = arith.subf %57, %64 : vector<16x32xf32>
      %66 = arith.mulf %65, %65 : vector<16x32xf32>
      %cst_42 = arith.constant dense<0.000000e+00> : vector<16xf32>
      %67 = vector.multi_reduction <add>, %66, %cst_42 [1] : vector<16x32xf32> to vector<16xf32>
      %68 = vector.shape_cast %67 : vector<16xf32> to vector<16x1xf32>
      %cst_43 = arith.constant 3.200000e+01 : f32
      %69 = vector.broadcast %cst_43 : f32 to vector<16x1xf32>
      %70 = arith.divf %68, %69 : vector<16x1xf32>
      %71 = vector.broadcast %63 : vector<16x1xf32> to vector<16x32xf32>
      %72 = arith.subf %57, %71 : vector<16x32xf32>
      %cst_44 = arith.constant 9.99999974E-6 : f32
      %73 = vector.broadcast %cst_44 : f32 to vector<16x1xf32>
      %74 = arith.addf %70, %73 : vector<16x1xf32>
      %75 = math.rsqrt %74 : vector<16x1xf32>
      %76 = vector.broadcast %75 : vector<16x1xf32> to vector<16x32xf32>
      %77 = arith.mulf %72, %76 : vector<16x32xf32>
      %78 = vector.broadcast %58 : vector<1x32xf32> to vector<16x32xf32>
      %79 = arith.mulf %77, %78 : vector<16x32xf32>
      %80 = vector.broadcast %59 : vector<1x32xf32> to vector<16x32xf32>
      %81 = arith.addf %79, %80 : vector<16x32xf32>
      %82 = arith.truncf %81 : vector<16x32xf32> to vector<16x32xbf16>
      %c0_45 = arith.constant 0 : index
      %c0_46 = arith.constant 0 : index
      %83 = vector.load %arg15[%c0_45, %c0_46] : memref<16x32xbf16, #tpu.memory_space<vmem>>, vector<16x32xbf16>
      tpu.vector_store %arg15[%c0_45, %c0_46], %82 {strides = array<i32>} : memref<16x32xbf16, #tpu.memory_space<vmem>>, vector<16x32xbf16>,
      %c0_47 = arith.constant 0 : index
      %c0_48 = arith.constant 0 : index
      %84 = vector.load %arg10[%c0_47, %c0_48] : memref<1x32xf32, #tpu.memory_space<vmem>>, vector<1x32xf32>
      %85 = vector.broadcast %84 : vector<1x32xf32> to vector<16x32xf32>
      %86 = arith.addf %33, %85 : vector<16x32xf32>
      %c0_49 = arith.constant 0 : index
      %c0_50 = arith.constant 0 : index
      %87 = vector.load %arg16[%c0_49, %c0_50] : memref<16x32xf32, #tpu.memory_space<vmem>>, vector<16x32xf32>
      tpu.vector_store %arg16[%c0_49, %c0_50], %86 {strides = array<i32>} : memref<16x32xf32, #tpu.memory_space<vmem>>, vector<16x32xf32>,
    } else {
    }
    %c0 = arith.constant 0 : index
    %c0_1 = arith.constant 0 : index
    %3 = vector.load %arg15[%c0, %c0_1] : memref<16x32xbf16, #tpu.memory_space<vmem>>, vector<16x32xbf16>
    %c0_2 = arith.constant 0 : index
    %c0_3 = arith.constant 0 : index
    %4 = vector.load %arg11[%c0_2, %c0_3] : memref<32x64xbf16, #tpu.memory_space<vmem>>, vector<32x64xbf16>
    %cst = arith.constant dense<0.000000e+00> : vector<16x64xf32>
    %5 = tpu.matmul %3, %4, %cst {dimension_numbers = #tpu.dot_dimension_numbers<[1], [0], [0], [1], [0, 0, 1, 1], [], []>} : vector<16x32xbf16>, vector<32x64xbf16>, vector<16x64xf32> -> vector<16x64xf32>
    %c0_4 = arith.constant 0 : index
    %c0_5 = arith.constant 0 : index
    %6 = vector.load %arg12[%c0_4, %c0_5] : memref<1x64xf32, #tpu.memory_space<vmem>>, vector<1x64xf32>
    %7 = vector.broadcast %6 : vector<1x64xf32> to vector<16x64xf32>
    %8 = arith.addf %5, %7 : vector<16x64xf32>
    %cst_6 = arith.constant 5.000000e-01 : f32
    %9 = vector.broadcast %cst_6 : f32 to vector<16x64xf32>
    %10 = arith.mulf %9, %8 : vector<16x64xf32>
    %cst_7 = arith.constant 0.707106769 : f32
    %11 = vector.broadcast %cst_7 : f32 to vector<16x64xf32>
    %12 = arith.mulf %8, %11 : vector<16x64xf32>
    %13 = math.erf %12 : vector<16x64xf32>
    %cst_8 = arith.constant 1.000000e+00 : f32
    %14 = vector.broadcast %cst_8 : f32 to vector<16x64xf32>
    %15 = arith.addf %14, %13 : vector<16x64xf32>
    %16 = arith.mulf %10, %15 : vector<16x64xf32>
    %c0_9 = arith.constant 0 : index
    %c0_10 = arith.constant 0 : index
    %17 = vector.load %arg16[%c0_9, %c0_10] : memref<16x32xf32, #tpu.memory_space<vmem>>, vector<16x32xf32>
    %18 = arith.truncf %16 : vector<16x64xf32> to vector<16x64xbf16>
    %c0_11 = arith.constant 0 : index
    %c0_12 = arith.constant 0 : index
    %19 = vector.load %arg13[%c0_11, %c0_12] : memref<64x32xbf16, #tpu.memory_space<vmem>>, vector<64x32xbf16>
    %cst_13 = arith.constant dense<0.000000e+00> : vector<16x32xf32>
    %20 = tpu.matmul %18, %19, %cst_13 {dimension_numbers = #tpu.dot_dimension_numbers<[1], [0], [0], [1], [0, 0, 1, 1], [], []>} : vector<16x64xbf16>, vector<64x32xbf16>, vector<16x32xf32> -> vector<16x32xf32>
    %21 = arith.addf %17, %20 : vector<16x32xf32>
    %c0_14 = arith.constant 0 : index
    %c0_15 = arith.constant 0 : index
    %22 = vector.load %arg16[%c0_14, %c0_15] : memref<16x32xf32, #tpu.memory_space<vmem>>, vector<16x32xf32>
    tpu.vector_store %arg16[%c0_14, %c0_15], %21 {strides = array<i32>} : memref<16x32xf32, #tpu.memory_space<vmem>>, vector<16x32xf32>,
    %c0_i32_16 = arith.constant 0 : i32
    %23 = arith.cmpi eq, %arg1, %c0_i32_16 : i32
    %24 = arith.extui %23 : i1 to i32
    %c0_i32_17 = arith.constant 0 : i32
    %25 = arith.cmpi ne, %24, %c0_i32_17 : i32
    scf.if %25 {
      %c0_18 = arith.constant 0 : index
      %c0_19 = arith.constant 0 : index
      %26 = vector.load %arg16[%c0_18, %c0_19] : memref<16x32xf32, #tpu.memory_space<vmem>>, vector<16x32xf32>
      %c0_20 = arith.constant 0 : index
      %c0_21 = arith.constant 0 : index
      %27 = vector.load %arg14[%c0_20, %c0_21] : memref<16x32xf32, #tpu.memory_space<vmem>>, vector<16x32xf32>
      tpu.vector_store %arg14[%c0_20, %c0_21], %26 {strides = array<i32>} : memref<16x32xf32, #tpu.memory_space<vmem>>, vector<16x32xf32>,
    } else {
    }
    return
  }
  func.func @transform_0(%arg0: i32, %arg1: i32) -> (i32, i32) {
    %c0_i32 = arith.constant 0 : i32
    %c0_i32_0 = arith.constant 0 : i32
    return %arg0, %c0_i32 : i32, i32
  }
  func.func @transform_1(%arg0: i32, %arg1: i32) -> (i32, i32) {
    %c0_i32 = arith.constant 0 : i32
    %c0_i32_0 = arith.constant 0 : i32
    return %arg0, %c0_i32 : i32, i32
  }
  func.func @transform_2(%arg0: i32, %arg1: i32) -> (i32, i32) {
    %c0_i32 = arith.constant 0 : i32
    %c0_i32_0 = arith.constant 0 : i32
    %c0_i32_1 = arith.constant 0 : i32
    return %c0_i32, %c0_i32_0 : i32, i32
  }
  func.func @transform_3(%arg0: i32, %arg1: i32) -> (i32, i32) {
    %c0_i32 = arith.constant 0 : i32
    %c0_i32_0 = arith.constant 0 : i32
    %c0_i32_1 = arith.constant 0 : i32
    return %c0_i32, %c0_i32_0 : i32, i32
  }
  func.func @transform_4(%arg0: i32, %arg1: i32) -> (i32, i32) {
    %c0_i32 = arith.constant 0 : i32
    %c0_i32_0 = arith.constant 0 : i32
    %c0_i32_1 = arith.constant 0 : i32
    return %c0_i32, %c0_i32_0 : i32, i32
  }
  func.func @transform_5(%arg0: i32, %arg1: i32) -> (i32, i32) {
    %c0_i32 = arith.constant 0 : i32
    %c0_i32_0 = arith.constant 0 : i32
    %c0_i32_1 = arith.constant 0 : i32
    return %c0_i32, %c0_i32_0 : i32, i32
  }
  func.func @transform_6(%arg0: i32, %arg1: i32) -> (i32, i32) {
    %c0_i32 = arith.constant 0 : i32
    %c0_i32_0 = arith.constant 0 : i32
    %c0_i32_1 = arith.constant 0 : i32
    return %c0_i32, %c0_i32_0 : i32, i32
  }
  func.func @transform_7(%arg0: i32, %arg1: i32) -> (i32, i32) {
    %c0_i32 = arith.constant 0 : i32
    %c0_i32_0 = arith.constant 0 : i32
    %c0_i32_1 = arith.constant 0 : i32
    return %c0_i32, %c0_i32_0 : i32, i32
  }
  func.func @transform_8(%arg0: i32, %arg1: i32) -> (i32, i32) {
    %c0_i32 = arith.constant 0 : i32
    %c0_i32_0 = arith.constant 0 : i32
    %c0_i32_1 = arith.constant 0 : i32
    return %c0_i32, %c0_i32_0 : i32, i32
  }
  func.func @transform_9(%arg0: i32, %arg1: i32) -> (i32, i32) {
    %c0_i32 = arith.constant 0 : i32
    %c0_i32_0 = arith.constant 0 : i32
    return %c0_i32, %arg1 : i32, i32
  }
  func.func @transform_10(%arg0: i32, %arg1: i32) -> (i32, i32) {
    %c0_i32 = arith.constant 0 : i32
    %c0_i32_0 = arith.constant 0 : i32
    return %c0_i32, %arg1 : i32, i32
  }
  func.func @transform_11(%arg0: i32, %arg1: i32) -> (i32, i32) {
    %c0_i32 = arith.constant 0 : i32
    %c0_i32_0 = arith.constant 0 : i32
    return %arg1, %c0_i32 : i32, i32
  }
  func.func @transform_12(%arg0: i32, %arg1: i32) -> (i32, i32) {
    %c0_i32 = arith.constant 0 : i32
    %c0_i32_0 = arith.constant 0 : i32
    return %arg0, %c0_i32 : i32, i32
  }
}

module attributes {stable_mosaic.version = 11 : i64} {
  func.func @final_norm_kernel(%arg0: i32, %arg1: memref<16x32xf32, #tpu.memory_space<vmem>>, %arg2: memref<1x32xf32, #tpu.memory_space<vmem>>, %arg3: memref<1x32xf32, #tpu.memory_space<vmem>>, %arg4: memref<16x32xf32, #tpu.memory_space<vmem>>) attributes {dimension_semantics = [#tpu.dimension_semantics<parallel>], iteration_bounds = array<i64: 1>, scalar_prefetch = 0 : i64, scratch_operands = 0 : i64, tpu.core_type = #tpu.core_type<tc>, window_params = [{transform_indices = @transform_0, window_bounds = array<i64: 16, 32>}, {pipeline_mode = #tpu.pipeline_mode<synchronous>, transform_indices = @transform_1, window_bounds = array<i64: 1, 32>}, {pipeline_mode = #tpu.pipeline_mode<synchronous>, transform_indices = @transform_2, window_bounds = array<i64: 1, 32>}, {transform_indices = @transform_3, window_bounds = array<i64: 16, 32>}]} {
    %c0 = arith.constant 0 : index
    %c0_0 = arith.constant 0 : index
    %0 = vector.load %arg1[%c0, %c0_0] : memref<16x32xf32, #tpu.memory_space<vmem>>, vector<16x32xf32>
    %c0_1 = arith.constant 0 : index
    %c0_2 = arith.constant 0 : index
    %1 = vector.load %arg2[%c0_1, %c0_2] : memref<1x32xf32, #tpu.memory_space<vmem>>, vector<1x32xf32>
    %c0_3 = arith.constant 0 : index
    %c0_4 = arith.constant 0 : index
    %2 = vector.load %arg3[%c0_3, %c0_4] : memref<1x32xf32, #tpu.memory_space<vmem>>, vector<1x32xf32>
    %cst = arith.constant dense<0.000000e+00> : vector<16xf32>
    %3 = vector.multi_reduction <add>, %0, %cst [1] : vector<16x32xf32> to vector<16xf32>
    %4 = vector.shape_cast %3 : vector<16xf32> to vector<16x1xf32>
    %cst_5 = arith.constant 3.200000e+01 : f32
    %5 = vector.broadcast %cst_5 : f32 to vector<16x1xf32>
    %6 = arith.divf %4, %5 : vector<16x1xf32>
    %7 = vector.broadcast %6 : vector<16x1xf32> to vector<16x32xf32>
    %8 = arith.subf %0, %7 : vector<16x32xf32>
    %9 = arith.mulf %8, %8 : vector<16x32xf32>
    %cst_6 = arith.constant dense<0.000000e+00> : vector<16xf32>
    %10 = vector.multi_reduction <add>, %9, %cst_6 [1] : vector<16x32xf32> to vector<16xf32>
    %11 = vector.shape_cast %10 : vector<16xf32> to vector<16x1xf32>
    %cst_7 = arith.constant 3.200000e+01 : f32
    %12 = vector.broadcast %cst_7 : f32 to vector<16x1xf32>
    %13 = arith.divf %11, %12 : vector<16x1xf32>
    %14 = vector.broadcast %6 : vector<16x1xf32> to vector<16x32xf32>
    %15 = arith.subf %0, %14 : vector<16x32xf32>
    %cst_8 = arith.constant 9.99999974E-6 : f32
    %16 = vector.broadcast %cst_8 : f32 to vector<16x1xf32>
    %17 = arith.addf %13, %16 : vector<16x1xf32>
    %18 = math.rsqrt %17 : vector<16x1xf32>
    %19 = vector.broadcast %18 : vector<16x1xf32> to vector<16x32xf32>
    %20 = arith.mulf %15, %19 : vector<16x32xf32>
    %21 = vector.broadcast %1 : vector<1x32xf32> to vector<16x32xf32>
    %22 = arith.mulf %20, %21 : vector<16x32xf32>
    %23 = vector.broadcast %2 : vector<1x32xf32> to vector<16x32xf32>
    %24 = arith.addf %22, %23 : vector<16x32xf32>
    %c0_9 = arith.constant 0 : index
    %c0_10 = arith.constant 0 : index
    %25 = vector.load %arg4[%c0_9, %c0_10] : memref<16x32xf32, #tpu.memory_space<vmem>>, vector<16x32xf32>
    tpu.vector_store %arg4[%c0_9, %c0_10], %24 {strides = array<i32>} : memref<16x32xf32, #tpu.memory_space<vmem>>, vector<16x32xf32>,
    return
  }
  func.func @transform_0(%arg0: i32) -> (i32, i32) {
    %c0_i32 = arith.constant 0 : i32
    %c0_i32_0 = arith.constant 0 : i32
    return %arg0, %c0_i32 : i32, i32
  }
  func.func @transform_1(%arg0: i32) -> (i32, i32) {
    %c0_i32 = arith.constant 0 : i32
    %c0_i32_0 = arith.constant 0 : i32
    %c0_i32_1 = arith.constant 0 : i32
    return %c0_i32, %c0_i32_0 : i32, i32
  }
  func.func @transform_2(%arg0: i32) -> (i32, i32) {
    %c0_i32 = arith.constant 0 : i32
    %c0_i32_0 = arith.constant 0 : i32
    %c0_i32_1 = arith.constant 0 : i32
    return %c0_i32, %c0_i32_0 : i32, i32
  }
  func.func @transform_3(%arg0: i32) -> (i32, i32) {
    %c0_i32 = arith.constant 0 : i32
    %c0_i32_0 = arith.constant 0 : i32
    return %arg0, %c0_i32 : i32, i32
  }
}

</mosaic_0001>

<bundles_post_ra>
// kernel: transformer_forward.13
= control target key start
LH: loop header
LB: loop body
LE: loop exit
PB: predicated region body
PF: predicated region fallthrough
CT: control target
= control target key end

     0   :  { %vm18_vm0 = vcmask 261120   ;;  %s118_s0 = inlined_call_operand.vmem [shape: f32[16,32], index: 0, kind: input, shape index: {}, may-alias: {0,3}]   ;;  %s119_s1 = inlined_call_operand.vmem [shape: f32[1,32], index: 1, kind: input, shape index: {}]   ;;  %s120_s2 = inlined_call_operand.vmem [shape: f32[1,32], index: 2, kind: input, shape index: {}]   ;;  %s121_s3 = inlined_call_operand.vmem [shape: f32[16,32], index: 3, kind: output, shape index: {}, may-alias: {0,3}]  }
   0x1   :  { %v14_v0 = vld [vmem:[%s118_s0] sm:$0xff]  ;;  %v15_v1 = vld [vmem:[%s118_s0 + $0x8] sm:$0xff] }
   0x2   :  { %v19_v2 = vsel %vm18_vm0, %v14_v0, 0.0  ;;  %v22_v3 = vsel %vm18_vm0, %v15_v1, 0.0  ;;  %v68_v21 = vld [vmem:[%s119_s1] ss:$0 sm:$0xff] }
   0x3   :  { %20 = vadd.xlane.f32.xlu0 %v19_v2  ;;  %v69_v23 = vld [vmem:[%s120_s2] ss:$0 sm:$0xff] }
   0x7   :  { %23 = vadd.xlane.f32.xlu0 %v22_v3 }
  0x8c   :  { %v21_v4 = vpop.xlane.xlu0 %20 }
  0x8d   :  { %v26_v5 = vmul.f32 0.03125, %v21_v4 }
  0x8f   :  { %v28_v6 = vsub.f32 %v14_v0, %v26_v5 }
  0x90   :  { %v24_v7 = vpop.xlane.xlu0 %23 }
  0x91   :  { %v27_v8 = vmul.f32 0.03125, %v24_v7  ;;  %v30_v9 = vmul.f32 %v28_v6, %v28_v6 }
  0x93   :  { %v29_v10 = vsub.f32 %v15_v1, %v27_v8  ;;  %v32_v11 = vsel %vm18_vm0, %v30_v9, 0.0 }
  0x94   :  { %33 = vadd.xlane.f32.xlu1 %v32_v11 }
  0x95   :  { %v31_v12 = vmul.f32 %v29_v10, %v29_v10 }
  0x97   :  { %v35_v13 = vsel %vm18_vm0, %v31_v12, 0.0 }
  0x98   :  { %36 = vadd.xlane.f32.xlu1 %v35_v13 }
 0x11d   :  { %v34_v14 = vpop.xlane.xlu1 %33 }
 0x11e   :  { %v38_v15 = vmul.f32 0.03125, %v34_v14 }
 0x120   :  { %v40_v16 = vadd.f32 1e-05, %v38_v15 }
 0x121   :  { %v37_v17 = vpop.xlane.xlu1 %36 }
 0x122   :  { %70 = vrsqrt.f32 %v40_v16  ;;  %v39_v18 = vmul.f32 0.03125, %v37_v17 }
 0x124   :  { %v41_v19 = vadd.f32 1e-05, %v39_v18 }
 0x126   :  { %72 = vrsqrt.f32 %v41_v19 }
 0x12f   :  { %v71_v20 = vpop.eup %70 }
 0x130   :  { %v44_v22 = vmul.f32 %v71_v20, %v28_v6 }
 0x132   :  { %v52_v24 = vmul.f32 %v68_v21, %v44_v22 }
 0x133   :  { %v73_v25 = vpop.eup %72 }
 0x134   :  { %v60_v26 = vadd.f32 %v69_v23, %v52_v24  ;;  %v45_v27 = vmul.f32 %v73_v25, %v29_v10 }
 0x136   :  { %62 = vst.msk [vmem:[%s121_s3] sm:$0xff] %vm18_vm0, %v60_v26  ;;  %v53_v28 = vmul.f32 %v68_v21, %v45_v27 }
 0x138   :  { %v61_v29 = vadd.f32 %v69_v23, %v53_v28 }
 0x13a   :  { %63 = vst.msk [vmem:[%s121_s3 + $0x8] sm:$0xff] %vm18_vm0, %v61_v29 }

// kernel: transformer_forward.7
= control target key start
LH: loop header
LB: loop body
LE: loop exit
PB: predicated region body
PF: predicated region fallthrough
CT: control target
= control target key end

     0   :  { %vm28_vm0 = vcmask 261120   ;;  %v210_v14 = vmov 0.0   ;;  %vm211_vm1 = vmmov 0   ;;  %vm148_vm2 = vcmask 257024   ;;  %s213_s14 = smov 96   ;;  %s304_s0 = inlined_call_operand.vmem [shape: f32[16,32], index: 0, kind: input, shape index: {}]   ;;  %s305_s3 = inlined_call_operand.vmem [shape: bf16[32,96], index: 3, kind: input, shape index: {}]   ;;  %s306_s1 = inlined_call_operand.vmem [shape: f32[1,32], index: 1, kind: input, shape index: {}]   ;;  %s307_s2 = inlined_call_operand.vmem [shape: f32[1,32], index: 2, kind: input, shape index: {}]   ;;  %s308_s4 = inlined_call_operand.vmem [shape: f32[1,96], index: 4, kind: input, shape index: {}]   ;;  %s309_s5 = inlined_call_operand.vmem [shape: bf16[16,32], index: 5, kind: output, shape index: {0}]   ;;  %s310_s7 = inlined_call_operand.vmem [shape: bf16[16,32], index: 7, kind: output, shape index: {2}]   ;;  %s311_s6 = inlined_call_operand.vmem [shape: bf16[16,32], index: 6, kind: output, shape index: {1}]  }
   0x1   :  { %v24_v0 = vld [vmem:[%s304_s0] sm:$0xff]  ;;  %v25_v1 = vld [vmem:[%s304_s0 + $0x8] sm:$0xff]  ;;  %192 = vmatprep.subr.bf16.mxu0 %v210_v14  ;;  %196 = vmatprep.mubr.msk.bf16.mxu0 %vm211_vm1, %v210_v14 }
   0x2   :  { %v29_v2 = vsel %vm28_vm0, %v24_v0, 0.0  ;;  %v32_v3 = vsel %vm28_vm0, %v25_v1, 0.0  ;;  %v204_v15 = vld [vmem:[%s305_s3 + $0x8] sm:$0xff]   ;;  %v205_v16 = vld [vmem:[%s305_s3] sm:$0xff]  }
   0x3   :  { %30 = vadd.xlane.f32.xlu0 %v29_v2  ;;  %193 = vmatpush3.bf16.msra.mxu0 %v204_v15  ;;  %v179_v25 = vld [vmem:[%s306_s1] ss:$0 sm:$0xff] }
   0x4   :  { %194 = vmatprep.subr.bf16.mxu0 %v210_v14  ;;  %v180_v29 = vld [vmem:[%s307_s2] ss:$0 sm:$0xff]  ;;  %s212_s2 = smov 64  }
   0x5   :  { %v181_v34 = vld [vmem:[%s308_s4] ss:$0 sm:$0xff] }
   0x7   :  { %33 = vadd.xlane.f32.xlu0 %v32_v3  ;;  %195 = vmatpush3.bf16.msra.mxu0 %v205_v16 }
  0x8c   :  { %v31_v4 = vpop.xlane.xlu0 %30 }
  0x8d   :  { %v36_v5 = vmul.f32 0.03125, %v31_v4 }
  0x8f   :  { %v38_v6 = vsub.f32 %v24_v0, %v36_v5 }
  0x90   :  { %v34_v7 = vpop.xlane.xlu0 %33 }
  0x91   :  { %v37_v8 = vmul.f32 0.03125, %v34_v7  ;;  %v40_v9 = vmul.f32 %v38_v6, %v38_v6 }
  0x93   :  { %v39_v10 = vsub.f32 %v25_v1, %v37_v8  ;;  %v42_v11 = vsel %vm28_vm0, %v40_v9, 0.0 }
  0x94   :  { %43 = vadd.xlane.f32.xlu1 %v42_v11 }
  0x95   :  { %v41_v12 = vmul.f32 %v39_v10, %v39_v10 }
  0x97   :  { %v45_v13 = vsel %vm28_vm0, %v41_v12, 0.0 }
  0x98   :  { %46 = vadd.xlane.f32.xlu1 %v45_v13 }
 0x11d   :  { %v44_v17 = vpop.xlane.xlu1 %43 }
 0x11e   :  { %v48_v18 = vmul.f32 0.03125, %v44_v17 }
 0x120   :  { %v50_v19 = vadd.f32 1e-05, %v48_v18 }
 0x121   :  { %v47_v20 = vpop.xlane.xlu1 %46 }
 0x122   :  { %206 = vrsqrt.f32 %v50_v19  ;;  %v49_v21 = vmul.f32 0.03125, %v47_v20 }
 0x124   :  { %v51_v22 = vadd.f32 1e-05, %v49_v21 }
 0x126   :  { %208 = vrsqrt.f32 %v51_v22 }
 0x12f   :  { %v207_v23 = vpop.eup %206 }
 0x130   :  { %v54_v24 = vmul.f32 %v207_v23, %v38_v6 }
 0x132   :  { %v62_v28 = vmul.f32 %v179_v25, %v54_v24 }
 0x133   :  { %v209_v26 = vpop.eup %208 }
 0x134   :  { %v55_v27 = vmul.f32 %v209_v26, %v39_v10  ;;  %v70_v31 = vadd.f32 %v180_v29, %v62_v28 }
 0x136   :  { %v63_v30 = vmul.f32 %v179_v25, %v55_v27 }
 0x138   :  { %v71_v32 = vadd.f32 %v180_v29, %v63_v30 }
 0x13a   :  { %v72_v33 = vpack.c.bf16 %v71_v32, %v70_v31 }
 0x13c   :  { %197 = vmatmul.mubr.msk.bf16.vlgmr.msra.gmra.mxu0 %vm28_vm0, %v72_v33 }
 0x1fc   :  { %v133_v35 = vpop.f32.mrf.mxu0 }
 0x1fd   :  { %v134_v36 = vadd.f32 %v181_v34, %v133_v35 }
 0x1fe   :  { %v198_v37 = vpop.f32.mrf.mxu0 }
 0x1ff   :  { %v187_v38 = vpack.c.bf16 %v134_v36, %v134_v36 }
 0x200   :  { %v136_v39 = vpop.f32.mrf.mxu0 }
 0x201   :  { %149 = vst.msk [vmem:[%s309_s5] sm:$0xf] %vm148_vm2, %v187_v38  ;;  %v137_v40 = vadd.f32 %v181_v34, %v136_v39  ;;  %159 = vrot.lane.b32.xlu1 %v187_v38, %s212_s2  ;;  %151 = vrot.lane.b32.xlu0 %v187_v38, %s213_s14 }
 0x202   :  { %v199_v41 = vpop.f32.mrf.mxu0 }
 0x203   :  { %v188_v42 = vpack.c.bf16 %v137_v40, %v137_v40 }
 0x205   :  { %150 = vst.msk [vmem:[%s309_s5 + $0x4] sm:$0xf] %vm148_vm2, %v188_v42  ;;  %153 = vrot.lane.b32.xlu1 %v188_v42, %s213_s14 }
 0x209   :  { %161 = vrot.lane.b32.xlu1 %v188_v42, %s212_s2 }
 0x273   :  { %v160_v43 = vpop.permute.xlu1 %159  ;;  %v152_v44 = vpop.permute.xlu0 %151 }
 0x274   :  { %165 = vst.msk [vmem:[%s310_s7] sm:$0xf] %vm148_vm2, %v160_v43  ;;  %157 = vst.msk [vmem:[%s311_s6] sm:$0xf] %vm148_vm2, %v152_v44 }
 0x277   :  { %v154_v45 = vpop.permute.xlu1 %153 }
 0x278   :  { %158 = vst.msk [vmem:[%s311_s6 + $0x4] sm:$0xf] %vm148_vm2, %v154_v45 }
 0x27b   :  { %v162_v46 = vpop.permute.xlu1 %161 }
 0x27c   :  { %166 = vst.msk [vmem:[%s310_s7 + $0x4] sm:$0xf] %vm148_vm2, %v162_v46 }

// kernel: transformer_forward.9
= control target key start
LH: loop header
LB: loop body
LE: loop exit
PB: predicated region body
PF: predicated region fallthrough
CT: control target
= control target key end

     0   :  { %v503_v0 = vmov 0.0   ;;  %vm504_vm0 = vmmov 0   ;;  %vm78_vm1 = vcmask 261120   ;;  %vm222_vm2 = vcmask 257024   ;;  %s657_s2 = inlined_call_operand.vmem [shape: bf16[32,32], index: 2, kind: input, shape index: {}]   ;;  %s658_s1 = inlined_call_operand.vmem [shape: bf16[16,32], index: 1, kind: input, shape index: {}]   ;;  %s659_s3 = inlined_call_operand.vmem [shape: f32[1,32], index: 3, kind: input, shape index: {}]   ;;  %s660_s0 = inlined_call_operand.vmem [shape: f32[16,32], index: 0, kind: input, shape index: {}, may-alias: {0,12}]   ;;  %s661_s8 = inlined_call_operand.vmem [shape: f32[1,32], index: 8, kind: input, shape index: {}]   ;;  %s662_s4 = inlined_call_operand.vmem [shape: f32[1,32], index: 4, kind: input, shape index: {}]   ;;  %s663_s5 = inlined_call_operand.vmem [shape: f32[1,32], index: 5, kind: input, shape index: {}]   ;;  %s664_s9 = inlined_call_operand.vmem [shape: bf16[32,64], index: 9, kind: input, shape index: {}]   ;;  %s665_s6 = inlined_call_operand.vmem [shape: f32[1,32], index: 6, kind: input, shape index: {}]   ;;  %s666_s7 = inlined_call_operand.vmem [shape: f32[1,32], index: 7, kind: input, shape index: {}]   ;;  %s667_s11 = inlined_call_operand.vmem [shape: bf16[64,32], index: 11, kind: input, shape index: {}]   ;;  %s668_s10 = inlined_call_operand.vmem [shape: f32[1,64], index: 10, kind: input, shape index: {}]   ;;  %s669_s12 = inlined_call_operand.vmem [shape: f32[16,32], index: 12, kind: output, shape index: {}, may-alias: {0,12}]  }
   0x1   :  { %451 = vmatprep.subr.bf16.mxu1 %v503_v0  ;;  %v481_v1 = vld [vmem:[%s657_s2 + $0x8] sm:$0xff]   ;;  %455 = vmatprep.mubr.msk.bf16.mxu1 %vm504_vm0, %v503_v0  ;;  %v482_v2 = vld [vmem:[%s657_s2] sm:$0xff]   ;;  %vm356_vm3 = vcmask 523264  }
   0x2   :  { %467 = vmatprep.subr.bf16.mxu0 %v503_v0  ;;  %475 = vmatprep.mubr.msk.bf16.mxu0 %vm504_vm0, %v503_v0  ;;  %v483_v3 = vld [vmem:[%s658_s1] sm:$0xff]   ;;  %v47_v11 = vld [vmem:[%s660_s0 + $0x8] sm:$0xff] }
   0x3   :  { %452 = vmatpush3.bf16.msra.mxu1 %v481_v1  ;;  %v416_v4 = vld [vmem:[%s659_s3] ss:$0 sm:$0xff]  ;;  %v484_v58 = vld [vmem:[%s664_s9 + $0x8] sm:$0xff]  }
   0x4   :  { %453 = vmatprep.subr.bf16.mxu1 %v503_v0  ;;  %v46_v5 = vld [vmem:[%s660_s0] sm:$0xff] }
   0x5   :  { %v427_v8 = vld [vmem:[%s661_s8] ss:$0 sm:$0xff] }
   0x6   :  { %v421_v37 = vld [vmem:[%s662_s4] ss:$0 sm:$0xff] }
   0x7   :  { %454 = vmatpush3.bf16.msra.mxu1 %v482_v2  ;;  %v422_v39 = vld [vmem:[%s663_s5] ss:$0 sm:$0xff] }
   0x8   :  { %459 = vmatprep.subr.bf16.mxu1 %v503_v0  ;;  %v485_v59 = vld [vmem:[%s664_s9] sm:$0xff]  }
   0xa   :  { %456 = vmatmul.mubr.msk.bf16.vlgmr.msra.gmra.mxu1 %vm78_vm1, %v483_v3 }
   0xb   :  { %463 = vmatprep.mubr.msk.bf16.mxu1 %vm504_vm0, %v503_v0  ;;  %460 = vmatpush3.bf16.msra.mxu1 %v484_v58 }
   0xc   :  { %461 = vmatprep.subr.bf16.mxu1 %v503_v0 }
   0xf   :  { %462 = vmatpush3.bf16.msra.mxu1 %v485_v59 }
  0xca   :  { %v116_v6 = vpop.f32.mrf.mxu1 }
  0xcb   :  { %v117_v7 = vadd.f32 %v416_v4, %v116_v6  ;;  %v424_v6 = vld [vmem:[%s666_s7] ss:$0 sm:$0xff] }
  0xcc   :  { %v457_v9 = vpop.f32.mrf.mxu1 }
  0xcd   :  { %v123_v10 = vadd.f32 %v117_v7, %v46_v5 }
  0xce   :  { %v119_v12 = vpop.f32.mrf.mxu1 }
  0xcf   :  { %v232_v13 = vadd.f32 %v427_v8, %v123_v10  ;;  %v120_v14 = vadd.f32 %v416_v4, %v119_v12  ;;  %v127_v15 = vsel %vm78_vm1, %v123_v10, 0.0  ;;  %v423_v4 = vld [vmem:[%s665_s6] ss:$0 sm:$0xff] }
  0xd0   :  { %v458_v16 = vpop.f32.mrf.mxu1  ;;  %128 = vadd.xlane.f32.xlu0 %v127_v15 }
  0xd1   :  { %234 = vst.msk [vmem:[#allocation3] sm:$0xff] %vm78_vm1, %v232_v13  ;;  %v124_v17 = vadd.f32 %v120_v14, %v47_v11  ;;  %v487_v16 = vld [vmem:[%s667_s11 + $0x18] sm:$0xff]  }
  0xd2   :  { %468 = vmatpush3.bf16.msra.mxu0 %v487_v16 }
  0xd3   :  { %v233_v18 = vadd.f32 %v427_v8, %v124_v17  ;;  %v130_v19 = vsel %vm78_vm1, %v124_v17, 0.0  ;;  %469 = vmatprep.subr.bf16.mxu0 %v503_v0 }
  0xd4   :  { %131 = vadd.xlane.f32.xlu0 %v130_v19  ;;  %v490_v19 = vld [vmem:[%s667_s11] sm:$0xff]  }
  0xd5   :  { %235 = vst.msk [vmem:[#allocation3 + $0x8] sm:$0xff] %vm78_vm1, %v233_v18  ;;  %v489_v18 = vld [vmem:[%s667_s11 + $0x8] sm:$0xff]  }
 0x159   :  { %v129_v20 = vpop.xlane.xlu0 %128 }
 0x15a   :  { %v134_v21 = vmul.f32 0.03125, %v129_v20  ;;  %v428_v20 = vld [vmem:[%s668_s10] ss:$0 sm:$0xff] }
 0x15c   :  { %v136_v22 = vsub.f32 %v123_v10, %v134_v21 }
 0x15d   :  { %v132_v23 = vpop.xlane.xlu0 %131 }
 0x15e   :  { %v135_v24 = vmul.f32 0.03125, %v132_v23  ;;  %v138_v25 = vmul.f32 %v136_v22, %v136_v22 }
 0x160   :  { %v137_v26 = vsub.f32 %v124_v17, %v135_v24  ;;  %v140_v27 = vsel %vm78_vm1, %v138_v25, 0.0  ;;  %v488_v17 = vld [vmem:[%s667_s11 + $0x10] sm:$0xff]  }
 0x161   :  { %141 = vadd.xlane.f32.xlu1 %v140_v27  ;;  %470 = vmatpush3.bf16.msra.mxu0 %v488_v17 }
 0x162   :  { %v139_v28 = vmul.f32 %v137_v26, %v137_v26  ;;  %471 = vmatprep.subr.bf16.mxu0 %v503_v0 }
 0x164   :  { %v143_v29 = vsel %vm78_vm1, %v139_v28, 0.0 }
 0x165   :  { %144 = vadd.xlane.f32.xlu1 %v143_v29  ;;  %472 = vmatpush3.bf16.msra.mxu0 %v489_v18 }
 0x166   :  { %473 = vmatprep.subr.bf16.mxu0 %v503_v0 }
 0x169   :  { %474 = vmatpush3.bf16.msra.mxu0 %v490_v19 }
 0x1ea   :  { %v142_v30 = vpop.xlane.xlu1 %141 }
 0x1eb   :  { %v146_v31 = vmul.f32 0.03125, %v142_v30 }
 0x1ed   :  { %v148_v32 = vadd.f32 1e-05, %v146_v31 }
 0x1ee   :  { %v145_v33 = vpop.xlane.xlu1 %144 }
 0x1ef   :  { %491 = vrsqrt.f32 %v148_v32  ;;  %v147_v34 = vmul.f32 0.03125, %v145_v33 }
 0x1f1   :  { %v149_v35 = vadd.f32 1e-05, %v147_v34 }
 0x1f3   :  { %493 = vrsqrt.f32 %v149_v35 }
 0x1fc   :  { %v492_v36 = vpop.eup %491 }
 0x1fd   :  { %v152_v38 = vmul.f32 %v492_v36, %v136_v22 }
 0x1ff   :  { %v160_v40 = vmul.f32 %v421_v37, %v152_v38 }
 0x200   :  { %v494_v41 = vpop.eup %493 }
 0x201   :  { %v168_v42 = vadd.f32 %v422_v39, %v160_v40  ;;  %v153_v43 = vmul.f32 %v494_v41, %v137_v26  ;;  %v322_v41 = vld [vmem:[#allocation3 + $0x8] sm:$0xff] }
 0x203   :  { %v172_v44 = vsel %vm78_vm1, %v168_v42, 0.0  ;;  %v161_v45 = vmul.f32 %v421_v37, %v153_v43  ;;  %v321_v37 = vld [vmem:[#allocation3] sm:$0xff] }
 0x204   :  { %173 = vadd.xlane.f32.xlu0 %v172_v44 }
 0x205   :  { %v169_v46 = vadd.f32 %v422_v39, %v161_v45 }
 0x207   :  { %v175_v47 = vsel %vm78_vm1, %v169_v46, 0.0 }
 0x208   :  { %176 = vadd.xlane.f32.xlu1 %v175_v47 }
 0x28d   :  { %v174_v48 = vpop.xlane.xlu0 %173 }
 0x28e   :  { %v178_v49 = vmul.f32 0.03125, %v174_v48 }
 0x290   :  { %v180_v50 = vsub.f32 %v168_v42, %v178_v49 }
 0x291   :  { %v177_v51 = vpop.xlane.xlu1 %176 }
 0x292   :  { %v179_v52 = vmul.f32 0.03125, %v177_v51  ;;  %v182_v53 = vmul.f32 %v180_v50, %v180_v50 }
 0x294   :  { %v181_v54 = vsub.f32 %v169_v46, %v179_v52  ;;  %v184_v55 = vsel %vm78_vm1, %v182_v53, 0.0 }
 0x295   :  { %185 = vadd.xlane.f32.xlu0 %v184_v55 }
 0x296   :  { %v183_v56 = vmul.f32 %v181_v54, %v181_v54 }
 0x298   :  { %v187_v57 = vsel %vm78_vm1, %v183_v56, 0.0 }
 0x299   :  { %188 = vadd.xlane.f32.xlu1 %v187_v57 }
 0x31e   :  { %v186_v60 = vpop.xlane.xlu0 %185 }
 0x31f   :  { %v190_v61 = vmul.f32 0.03125, %v186_v60 }
 0x321   :  { %v192_v62 = vadd.f32 1e-05, %v190_v61 }
 0x322   :  { %v189_v63 = vpop.xlane.xlu1 %188 }
 0x323   :  { %495 = vrsqrt.f32 %v192_v62  ;;  %v191_v1 = vmul.f32 0.03125, %v189_v63 }
 0x325   :  { %v193_v2 = vadd.f32 1e-05, %v191_v1 }
 0x327   :  { %497 = vrsqrt.f32 %v193_v2 }
 0x330   :  { %v496_v3 = vpop.eup %495 }
 0x331   :  { %v196_v5 = vmul.f32 %v496_v3, %v180_v50 }
 0x333   :  { %v204_v7 = vmul.f32 %v423_v4, %v196_v5 }
 0x334   :  { %v498_v8 = vpop.eup %497 }
 0x335   :  { %v212_v9 = vadd.f32 %v424_v6, %v204_v7  ;;  %v197_v10 = vmul.f32 %v498_v8, %v181_v54 }
 0x337   :  { %v438_v11 = vpack.c.bf16 %v212_v9, %v212_v9  ;;  %v205_v12 = vmul.f32 %v423_v4, %v197_v10 }
 0x339   :  { %223 = vst.msk [vmem:[#allocation2] sm:$0xf] %vm222_vm2, %v438_v11  ;;  %v213_v13 = vadd.f32 %v424_v6, %v205_v12 }
 0x33b   :  { %v439_v14 = vpack.c.bf16 %v213_v13, %v213_v13 }
 0x33d   :  { %224 = vst.msk [vmem:[#allocation2 + $0x4] sm:$0xf] %vm222_vm2, %v439_v14 }
 0x344   :  { %v486_v15 = vld [vmem:[#allocation2] sm:$0xff]  }
 0x345   :  { %464 = vmatmul.mubr.msk.bf16.vlgmr.msra.gmra.mxu1 %vm78_vm1, %v486_v15 }
 0x405   :  { %v304_v21 = vpop.f32.mrf.mxu1 }
 0x406   :  { %v305_v22 = vadd.f32 %v428_v20, %v304_v21 }
 0x407   :  { %v465_v23 = vpop.f32.mrf.mxu1 }
 0x408   :  { %v313_v24 = vmul.f32 0.70710677, %v305_v22  ;;  %v311_v31 = vmul.f32 0.5, %v305_v22 }
 0x409   :  { %v307_v25 = vpop.f32.mrf.mxu1 }
 0x40a   :  { %499 = verf.f32 %v313_v24  ;;  %v308_v26 = vadd.f32 %v428_v20, %v307_v25 }
 0x40b   :  { %v466_v27 = vpop.f32.mrf.mxu1 }
 0x40c   :  { %v314_v28 = vmul.f32 0.70710677, %v308_v26  ;;  %v312_v32 = vmul.f32 0.5, %v308_v26 }
 0x40e   :  { %501 = verf.f32 %v314_v28 }
 0x417   :  { %v500_v0 = vpop.eup %499 }
 0x418   :  { %v317_v29 = vadd.f32 1.0, %v500_v0 }
 0x41a   :  { %v319_v34 = vmul.f32 %v317_v29, %v311_v31 }
 0x41b   :  { %v502_v30 = vpop.eup %501 }
 0x41c   :  { %v318_v33 = vadd.f32 1.0, %v502_v30 }
 0x41e   :  { %v320_v35 = vmul.f32 %v318_v33, %v312_v32 }
 0x420   :  { %v323_v36 = vpack.c.bf16 %v320_v35, %v319_v34 }
 0x422   :  { %476 = vmatmul.mubr.msk.bf16.vlgmr.msra.gmra.mxu0 %vm356_vm3, %v323_v36 }
 0x4e2   :  { %v394_v38 = vpop.f32.mrf.mxu0 }
 0x4e3   :  { %v401_v39 = vadd.f32 %v394_v38, %v321_v37 }
 0x4e4   :  { %v477_v40 = vpop.f32.mrf.mxu0 }
 0x4e5   :  { %403 = vst.msk [vmem:[#allocation3] sm:$0xff] %vm78_vm1, %v401_v39 }
 0x4e6   :  { %v397_v42 = vpop.f32.mrf.mxu0 }
 0x4e7   :  { %v402_v43 = vadd.f32 %v397_v42, %v322_v41 }
 0x4e8   :  { %v478_v44 = vpop.f32.mrf.mxu0 }
 0x4e9   :  { %404 = vst.msk [vmem:[#allocation3 + $0x8] sm:$0xff] %vm78_vm1, %v402_v43 }
 0x4ec   :  { %v408_v45 = vld [vmem:[#allocation3] sm:$0xff] }
 0x4ed   :  { %410 = vst.msk [vmem:[%s669_s12] sm:$0xff] %vm78_vm1, %v408_v45 }
 0x4f0   :  { %v409_v46 = vld [vmem:[#allocation3 + $0x8] sm:$0xff] }
 0x4f1   :  { %411 = vst.msk [vmem:[%s669_s12 + $0x8] sm:$0xff] %vm78_vm1, %v409_v46 }

// kernel: transformer_forward.8
= control target key start
LH: loop header
LB: loop body
LE: loop exit
PB: predicated region body
PF: predicated region fallthrough
CT: control target
= control target key end

     0   :  { %s1070_s12 = smov 0   ;;  %s1072_s13 = smov 0   ;;  %s1190_s0 = inlined_call_operand.vmem [shape: bf16[16,32], index: 0, kind: input, shape index: {}]   ;;  %s1191_s1 = inlined_call_operand.vmem [shape: bf16[16,32], index: 1, kind: input, shape index: {}]   ;;  %s1192_s2 = inlined_call_operand.vmem [shape: bf16[16,32], index: 2, kind: input, shape index: {}]   ;;  %s1193_s3 = inlined_call_operand.vmem [shape: bf16[16,32], index: 3, kind: output, shape index: {}]  }
   0x1   :  { %s1074_s14 = smov 0  }
   0x2 LB: > { %s25_s15 = sadd.s32 1, %s1036_s13  ;;  %p867_p0 = scmp.ge.s32.totalorder %s1040_s14, 1  ;;  %s1040_s14 = sphi %s1074_s14, %s13_s14   ;;  %s1036_s13 = sphi %s1072_s13, %s1195_s13   ;;  %s1032_s12 = sphi %s1070_s12, %s1194_s12  }
   0x3   : > { %p27_p1 = scmp.ge.s32.totalorder %s25_s15, 2  ;;  %p183_p2 = scmp.lt.s32.totalorder %s1040_s14, 3 }
   0x5   : > { %s1197_s15 = smov (%p27_p1, %s25_s15), 0  ;;  %p184_p3 = pnand %p867_p0, %p183_p2 }
   0x6   : > { %p225_p4 = scmp.lt.s32.totalorder (!%p184_p3), %s1032_s12, 1  ;;  %s1044_s23 = smov (!%p184_p3), 120  }
   0x7   : > { %187 = sbr.rel (%p184_p3) target bundleno = 1410 (0x582), region = 32  ;;  %s1045_s24 = smov (!%p184_p3), 112  }
   0x8   : > { %s1046_s25 = smov (!%p184_p3), 104   ;;  %s1047_s5 = smov (!%p184_p3), 8  }
   0x9   : > { %s1048_s6 = smov (!%p184_p3), 16   ;;  %s1049_s7 = smov (!%p184_p3), 24  }
   0xc   : > { %v1042_v0 = vmov 0.0   ;;  %vm1043_vm0 = vmmov 0   ;;  %s1199_s12 = smov (!%p225_p4, %s1032_s12), 1  ;;  %vm257_vm1 = vcmask 64512   ;;  %vm319_vm2 = vcmask 1043456  }
   0xd   : > { %913 = vmatprep.subr.bf16.mxu0 %v1042_v0  ;;  %915 = vmatprep.mubr.msk.bf16.mxu0 %vm1043_vm0, %v1042_v0  ;;  %s1094_s16 = sshll.u32 %s1199_s12, 2  ;;  %vm364_vm3 = vcmask 60416   ;;  %vm495_vm4 = vcmask 126016   ;;  %vm626_vm5 = vcmask 191616   ;;  %vm757_vm6 = vcmask 257216  }
   0xe   : > { %919 = vmatprep.subr.bf16.mxu1 %v1042_v0  ;;  %921 = vmatprep.mubr.msk.bf16.mxu1 %vm1043_vm0, %v1042_v0  ;;  %s1100_s19 = scalar_lea.vmem %s1191_s1, %s1094_s16  ;;  %s231_s22 = scalar_lea.vmem %s1190_s0, %s1094_s16 }
   0xf   : > { %v255_v1 = vld [vmem:[%s1100_s19] sm:$0xf]  ;;  %s1125_s28 = scalar_lea.vmem %s1192_s2, %s1094_s16  ;;  %s1151_s4 = scalar_lea.vmem %s1193_s3, %s1094_s16 }
  0x10   : > { %v262_v2 = vsel %vm257_vm1, %v255_v1, 0  ;;  %v254_v3 = vld [vmem:[%s231_s22] sm:$0xf] }
  0x11   : > { %914 = vmatpush3.bf16.xpose.msra.mxu0 %v262_v2  ;;  %v993_v9 = vld [vmem:[%s1100_s19] ss:$0 sps:$4 sm:$0xff]  }
  0x12   : > { %931 = vmatprep.subr.bf16.mxu0 %v1042_v0  ;;  %377 = vrot.lane.b32.xlu1 %v993_v9, %s1044_s23  ;;  %v994_v10 = vld [vmem:[%s231_s22] ss:$0 sps:$4 sm:$0xff]  }
  0x13   : > { %v996_v11 = vld [vmem:[%s231_s22] ss:$0 sps:$4 sm:$0xff]  }
  0x14   : > { %v997_v12 = vld [vmem:[%s1100_s19] ss:$0 sps:$4 sm:$0xff]  }
  0x15   : > { %v998_v13 = vld [vmem:[%s231_s22] ss:$0 sps:$4 sm:$0xff]  }
  0x16   : > { %372 = vrot.lane.b32.xlu1 %v994_v10, %s1044_s23  ;;  %v256_v19 = vld [vmem:[%s1125_s28] sm:$0xf] }
  0x17   : > { %v321_v20 = vsel %vm319_vm2, %v256_v19, 0  ;;  %v995_v21 = vld [vmem:[%s1100_s19] ss:$0 sps:$4 sm:$0xff]  }
  0x18   : > { %916 = vmatmul.mubr.msk.bf16.vlgmr.msra.gmra.mxu0 %vm257_vm1, %v254_v3  ;;  %920 = vmatpush3.bf16.msra.mxu1 %v321_v20  ;;  %v999_v2 = vld [vmem:[%s1125_s28] ss:$0 sps:$4 sm:$0xff]  }
  0x19   : > { %933 = vmatprep.mubr.msk.bf16.mxu0 %vm1043_vm0, %v1042_v0  ;;  %925 = vmatprep.subr.bf16.mxu1 %v1042_v0  ;;  %v1001_v9 = vld [vmem:[%s1125_s28] ss:$0 sps:$4 sm:$0xff]  }
  0x1a   : > { %503 = vrot.lane.b32.xlu1 %v996_v11, %s1045_s24 }
  0x1e   : > { %639 = vrot.lane.b32.xlu1 %v997_v12, %s1046_s25 }
  0x22   : > { %634 = vrot.lane.b32.xlu1 %v998_v13, %s1046_s25 }
  0x84   : > { %v378_v24 = vpop.permute.xlu1 %377 }
  0x85   : > { %v383_v26 = vsel %vm257_vm1, %v378_v24, 0 }
  0x88   : > { %v373_v28 = vpop.permute.xlu1 %372 }
  0x8c   : > { %v504_v30 = vpop.permute.xlu1 %503 }
  0x90   : > { %v640_v32 = vpop.permute.xlu1 %639 }
  0x91   : > { %v645_v33 = vsel %vm257_vm1, %v640_v32, 0 }
  0x94   : > { %v635_v34 = vpop.permute.xlu1 %634 }
  0xd8   : > { %v298_v4 = vpop.f32.mrf.mxu0 }
  0xd9   : > { %v304_v5 = vsel %vm257_vm1, %v298_v4, -inf }
  0xda   : > { %305 = vmax.xlane.f32.xlu0 %v304_v5  ;;  %v917_v6 = vpop.f32.mrf.mxu0 }
  0xdc   : > { %v301_v7 = vpop.f32.mrf.mxu0 }
  0xde   : > { %v918_v8 = vpop.f32.mrf.mxu0 }
 0x163   : > { %v306_v14 = vpop.xlane.xlu0 %305 }
 0x164   : > { %v307_v15 = vsub.f32 %v298_v4, %v306_v14  ;;  %v1000_v4 = vld [vmem:[%s1125_s28] ss:$0 sps:$4 sm:$0xff]  }
 0x166   : > { %v308_v16 = vmul.f32 1.442695, %v307_v15 }
 0x168   : > { %1002 = vpow2.f32 %v308_v16 }
 0x175   : > { %v1003_v17 = vpop.eup %1002 }
 0x176   : > { %v310_v18 = vsel %vm257_vm1, %v1003_v17, 0.0 }
 0x177   : > { %311 = vadd.xlane.f32.xlu0 %v310_v18 }
 0x18d   : > { %508 = vrot.lane.b32.xlu0 %v995_v21, %s1045_s24 }
 0x200   : > { %v312_v22 = vpop.xlane.xlu0 %311 }
 0x201   : > { %1004 = vrcp.f32 %v312_v22 }
 0x204   : > { %v509_v29 = vpop.permute.xlu0 %508 }
 0x205   : > { %v514_v31 = vsel %vm257_vm1, %v509_v29, 0 }
 0x20e   : > { %v1005_v23 = vpop.eup %1004 }
 0x20f   : > { %v314_v25 = vmul.f32 %v1005_v23, %v1003_v17 }
 0x211   : > { %v315_v27 = vpack.c.bf16 %v314_v25, %v314_v25 }
 0x213   : > { %922 = vmatmul.mubr.msk.bf16.vlgmr.msra.gmra.mxu1 %vm257_vm1, %v315_v27 }
 0x214   : > { %926 = vmatpush3.bf16.xpose.msra.mxu1 %v383_v26  ;;  %927 = vmatprep.mubr.msk.bf16.mxu1 %vm1043_vm0, %v1042_v0 }
 0x215   : > { %937 = vmatprep.subr.bf16.mxu1 %v1042_v0 }
 0x21b   : > { %928 = vmatmul.mubr.msk.bf16.vlgmr.msra.gmra.mxu1 %vm257_vm1, %v373_v28 }
 0x21c   : > { %938 = vmatpush3.bf16.xpose.msra.mxu1 %v514_v31  ;;  %939 = vmatprep.mubr.msk.bf16.mxu1 %vm1043_vm0, %v1042_v0 }
 0x21d   : > { %949 = vmatprep.subr.bf16.mxu1 %v1042_v0 }
 0x223   : > { %940 = vmatmul.mubr.msk.bf16.vlgmr.msra.gmra.mxu1 %vm257_vm1, %v504_v30 }
 0x224   : > { %950 = vmatpush3.bf16.xpose.msra.mxu1 %v645_v33  ;;  %951 = vmatprep.mubr.msk.bf16.mxu1 %vm1043_vm0, %v1042_v0 }
 0x22b   : > { %952 = vmatmul.mubr.msk.bf16.vlgmr.msra.gmra.mxu1 %vm257_vm1, %v635_v34 }
 0x2d3   : > { %v357_v35 = vpop.f32.mrf.mxu1 }
 0x2d4   : > { %v363_v36 = vpack.c.bf16 %v357_v35, %v357_v35 }
 0x2d5   : > { %v923_v37 = vpop.f32.mrf.mxu1 }
 0x2d6   : > { %365 = vst.msk [vmem:[%s1151_s4] sm:$0xf] %vm364_vm3, %v363_v36 }
 0x2d7   : > { %v360_v38 = vpop.f32.mrf.mxu1 }
 0x2d9   : > { %v924_v39 = vpop.f32.mrf.mxu1 }
 0x2db   : > { %v419_v40 = vpop.f32.mrf.mxu1 }
 0x2dc   : > { %v425_v41 = vsel %vm257_vm1, %v419_v40, -inf }
 0x2dd   : > { %426 = vmax.xlane.f32.xlu1 %v425_v41  ;;  %v929_v42 = vpop.f32.mrf.mxu1 }
 0x2df   : > { %v422_v43 = vpop.f32.mrf.mxu1 }
 0x2e1   : > { %v930_v44 = vpop.f32.mrf.mxu1 }
 0x2e3   : > { %v550_v45 = vpop.f32.mrf.mxu1 }
 0x2e4   : > { %v556_v46 = vsel %vm257_vm1, %v550_v45, -inf }
 0x2e5   : > { %557 = vmax.xlane.f32.xlu0 %v556_v46  ;;  %v941_v47 = vpop.f32.mrf.mxu1 }
 0x2e7   : > { %v553_v48 = vpop.f32.mrf.mxu1 }
 0x2e9   : > { %v942_v49 = vpop.f32.mrf.mxu1 }
 0x2eb   : > { %v681_v50 = vpop.f32.mrf.mxu1 }
 0x2ec   : > { %v687_v51 = vsel %vm257_vm1, %v681_v50, -inf }
 0x2ed   : > { %688 = vmax.xlane.f32.xlu1 %v687_v51  ;;  %v953_v52 = vpop.f32.mrf.mxu1 }
 0x2ef   : > { %v684_v53 = vpop.f32.mrf.mxu1 }
 0x2f1   : > { %v954_v54 = vpop.f32.mrf.mxu1 }
 0x366   : > { %v427_v55 = vpop.xlane.xlu1 %426 }
 0x367   : > { %v428_v56 = vsub.f32 %v419_v40, %v427_v55 }
 0x369   : > { %v429_v57 = vmul.f32 1.442695, %v428_v56 }
 0x36b   : > { %1006 = vpow2.f32 %v429_v57 }
 0x36e   : > { %v558_v58 = vpop.xlane.xlu0 %557 }
 0x36f   : > { %v559_v59 = vsub.f32 %v550_v45, %v558_v58 }
 0x371   : > { %v560_v60 = vmul.f32 1.442695, %v559_v59 }
 0x373   : > { %1008 = vpow2.f32 %v560_v60 }
 0x376   : > { %v689_v3 = vpop.xlane.xlu1 %688 }
 0x377   : > { %v690_v5 = vsub.f32 %v681_v50, %v689_v3 }
 0x378   : > { %v1007_v61 = vpop.eup %1006 }
 0x379   : > { %v431_v62 = vsel %vm257_vm1, %v1007_v61, 0.0  ;;  %v691_v6 = vmul.f32 1.442695, %v690_v5 }
 0x37a   : > { %432 = vadd.xlane.f32.xlu1 %v431_v62 }
 0x37b   : > { %1010 = vpow2.f32 %v691_v6 }
 0x380   : > { %v1009_v63 = vpop.eup %1008 }
 0x381   : > { %v562_v1 = vsel %vm257_vm1, %v1009_v63, 0.0 }
 0x382   : > { %563 = vadd.xlane.f32.xlu0 %v562_v1 }
 0x388   : > { %v1011_v7 = vpop.eup %1010 }
 0x389   : > { %v693_v8 = vsel %vm257_vm1, %v1011_v7, 0.0 }
 0x38b   : > { %571 = vrot.lane.b32.xlu1 %v999_v2, %s1045_s24 }
 0x398   : > { %440 = vrot.lane.b32.xlu0 %v1000_v4, %s1044_s23 }
 0x3af   : > { %694 = vadd.xlane.f32.xlu1 %v693_v8 }
 0x3c0   : > { %702 = vrot.lane.b32.xlu1 %v1001_v9, %s1046_s25 }
 0x403   : > { %v433_v10 = vpop.xlane.xlu1 %432 }
 0x404   : > { %1012 = vrcp.f32 %v433_v10 }
 0x407   : > { %v572_v16 = vpop.permute.xlu1 %571 }
 0x408   : > { %v577_v18 = vsel %vm319_vm2, %v572_v16, 0 }
 0x40b   : > { %v564_v11 = vpop.xlane.xlu0 %563 }
 0x40c   : > { %1014 = vrcp.f32 %v564_v11 }
 0x40f   : > { %v441_v12 = vpop.permute.xlu0 %440 }
 0x410   : > { %v446_v13 = vsel %vm319_vm2, %v441_v12, 0 }
 0x411   : > { %v1013_v14 = vpop.eup %1012  ;;  %932 = vmatpush3.bf16.msra.mxu0 %v446_v13 }
 0x412   : > { %943 = vmatprep.subr.bf16.mxu0 %v1042_v0  ;;  %v435_v15 = vmul.f32 %v1013_v14, %v1007_v61 }
 0x414   : > { %v436_v17 = vpack.c.bf16 %v435_v15, %v435_v15 }
 0x416   : > { %934 = vmatmul.mubr.msk.bf16.vlgmr.msra.gmra.mxu0 %vm257_vm1, %v436_v17 }
 0x417   : > { %944 = vmatpush3.bf16.msra.mxu0 %v577_v18  ;;  %945 = vmatprep.mubr.msk.bf16.mxu0 %vm1043_vm0, %v1042_v0 }
 0x418   : > { %955 = vmatprep.subr.bf16.mxu0 %v1042_v0 }
 0x419   : > { %v1015_v19 = vpop.eup %1014 }
 0x41a   : > { %v566_v20 = vmul.f32 %v1015_v19, %v1009_v63 }
 0x41c   : > { %v567_v21 = vpack.c.bf16 %v566_v20, %v566_v20 }
 0x41e   : > { %946 = vmatmul.mubr.msk.bf16.vlgmr.msra.gmra.mxu0 %vm257_vm1, %v567_v21 }
 0x41f   : > { %957 = vmatprep.mubr.msk.bf16.mxu0 %vm1043_vm0, %v1042_v0 }
 0x438   : > { %v695_v22 = vpop.xlane.xlu1 %694 }
 0x439   : > { %1016 = vrcp.f32 %v695_v22 }
 0x43c   : > { %v703_v23 = vpop.permute.xlu1 %702 }
 0x43d   : > { %v708_v24 = vsel %vm319_vm2, %v703_v23, 0 }
 0x43e   : > { %956 = vmatpush3.bf16.msra.mxu0 %v708_v24 }
 0x446   : > { %v1017_v25 = vpop.eup %1016 }
 0x447   : > { %v697_v26 = vmul.f32 %v1017_v25, %v1011_v7 }
 0x449   : > { %v698_v27 = vpack.c.bf16 %v697_v26, %v697_v26 }
 0x44b   : > { %958 = vmatmul.mubr.msk.bf16.vlgmr.msra.gmra.mxu0 %vm257_vm1, %v698_v27 }
 0x4d6   : > { %v482_v28 = vpop.f32.mrf.mxu0 }
 0x4d7   : > { %v894_v29 = vpack.c.bf16 %v482_v28, %v482_v28 }
 0x4d8   : > { %v935_v30 = vpop.f32.mrf.mxu0 }
 0x4d9   : > { %492 = vrot.lane.b32.xlu0 %v894_v29, %s1047_s5 }
 0x4da   : > { %v485_v31 = vpop.f32.mrf.mxu0 }
 0x4dc   : > { %v936_v32 = vpop.f32.mrf.mxu0 }
 0x4de   : > { %v613_v33 = vpop.f32.mrf.mxu0 }
 0x4df   : > { %v895_v0 = vpack.c.bf16 %v613_v33, %v613_v33 }
 0x4e0   : > { %v947_v34 = vpop.f32.mrf.mxu0 }
 0x4e1   : > { %623 = vrot.lane.b32.xlu1 %v895_v0, %s1048_s6 }
 0x4e2   : > { %v616_v35 = vpop.f32.mrf.mxu0 }
 0x4e4   : > { %v948_v36 = vpop.f32.mrf.mxu0 }
 0x50b   : > { %v744_v37 = vpop.f32.mrf.mxu0 }
 0x50c   : > { %v896_v38 = vpack.c.bf16 %v744_v37, %v744_v37 }
 0x50d   : > { %v959_v39 = vpop.f32.mrf.mxu0 }
 0x50e   : > { %754 = vrot.lane.b32.xlu0 %v896_v38, %s1049_s7 }
 0x50f   : > { %v747_v40 = vpop.f32.mrf.mxu0 }
 0x511   : > { %v960_v41 = vpop.f32.mrf.mxu0 }
 0x54b   : > { %v493_v42 = vpop.permute.xlu0 %492 }
 0x54c   : > { %496 = vst.msk [vmem:[%s1151_s4] sm:$0xf] %vm495_vm4, %v493_v42 }
 0x553   : > { %v624_v43 = vpop.permute.xlu1 %623 }
 0x554   : > { %627 = vst.msk [vmem:[%s1151_s4] sm:$0xf] %vm626_vm5, %v624_v43 }
 0x580   : > { %v755_v44 = vpop.permute.xlu0 %754 }
 0x581   : > { %758 = vst.msk [vmem:[%s1151_s4] sm:$0xf] %vm757_vm6, %v755_v44 }
 0x582 PF: > { %s13_s14 = sadd.s32 1, %s1040_s14   ;;  %s1194_s12 = smov %s1036_s13 }
 0x583   : > { %p10_p5 = scmp.ge.s32.totalorder %s13_s14, 4   ;;  %s1195_s13 = smov %s1197_s15 }
 0x585   :  { %12 = sbr.rel (!%p10_p5) target bundleno = 2 (0x2), region = 68 }

</bundles_post_ra>
